<compile_context>
chip_gen: v7x
topology: tpu7x:2x2x1
jax: 0.10.0
libtpu: 0.0.40
codegen_flags: <defaults>
</compile_context>

<pallas_src>
import jax
import jax.numpy as jnp
from jax.experimental import pallas as pl
from jax.experimental.pallas import tpu as pltpu


def conv1d_sizes(num_layers=4, num_in_c=3, num_out_c=4096):
    """Mirror Conv_1D.__init__ channel-size computation (Python round/pow)."""
    num_out_1 = 64
    factor = pow(num_out_1 / num_out_c, 1.0 / (num_layers - 1))
    return [num_in_c] + [round(num_out_1 / pow(factor, i)) for i in range(num_layers)]


def _round_up(x, m):
    return (x + m - 1) // m * m


def _make_kernel(num_layers, batch_tile, length, length_pad, packed):
    rows = batch_tile * length_pad

    def kernel(alphas_ref, x_ref, *refs):
        o_ref = refs[-1]
        wb = refs[:-1]  # (w1, b1, w2, b2, ..., wN, bN)

        # (TB, Lp, C_in) -> (TB*Lp, C_in); f32 working precision between layers.
        h = x_ref[...].reshape(rows, x_ref.shape[-1])
        if h.dtype != jnp.float32:
            h = h.astype(jnp.float32)

        # Position of each row inside its (padded) sequence.  Rows whose prev/next
        # neighbor would cross a sequence boundary are masked to zero, reproducing
        # per-sequence zero padding.  Rows at pos >= `length` are L-padding: they
        # never feed real rows (pos == length-1 masks its next neighbor) and are
        # discarded by the wrapper.
        row_ids = jax.lax.broadcasted_iota(jnp.int32, (rows, 1), 0)
        pos = row_ids % length_pad
        not_first = pos != 0
        not_last = pos != (length - 1)

        for li in range(num_layers):
            w_ref = wb[2 * li]       # (3, C_in, C_out) or packed (3*C_in, C_out)
            b_ref = wb[2 * li + 1]   # (1, C_out), f32
            wdt = w_ref.dtype

            # Shifted-neighbor rows via XLU sublane rotates (free slot vs MXU/VPU);
            # the wrapped rows are exactly the masked boundary rows, so results match
            # the concatenate-based construction.  Rolls kept in f32 (native 32-bit
            # sublane rotate); bf16 cast happens at the dot operands.
            h_prev = jnp.where(not_first, pltpu.roll(h, 1, axis=0), 0.0)
            h_next = jnp.where(not_last, pltpu.roll(h, rows - 1, axis=0), 0.0)

            if packed[li]:
                # Tiny C_in: fuse the three taps into one K=3*C_in MXU matmul.
                lhs = jnp.concatenate([h_prev, h, h_next], axis=1).astype(wdt)
                y = jnp.dot(lhs, w_ref[...], preferred_element_type=jnp.float32)
            else:
                y = jnp.dot(h_prev.astype(wdt), w_ref[0],
                            preferred_element_type=jnp.float32)
                y = y + jnp.dot(h.astype(wdt), w_ref[1],
                                preferred_element_type=jnp.float32)
                y = y + jnp.dot(h_next.astype(wdt), w_ref[2],
                                preferred_element_type=jnp.float32)
            y = y + b_ref[...]           # bias already f32

            if li < num_layers - 1:      # PReLU after every layer but the last
                alpha = alphas_ref[li]   # scalar read from SMEM
                y = jnp.where(y > 0, y, alpha * y)
            h = y

        o_ref[...] = h.reshape(batch_tile, length_pad, h.shape[-1]).astype(o_ref.dtype)

    return kernel


def conv1d_forward(params, x, *, batch_tile=None, compute_dtype=jnp.bfloat16,
                   out_dtype=None):
    """x: (B, C_in, L) (PyTorch Conv1d layout). Returns (B, C_out, L)."""
    layers = params["layers"]
    alphas = params["alphas"]
    num_layers = len(layers)
    B, c_in, L = x.shape
    c_out = layers[-1][0].shape[-1]
    out_dtype = jnp.dtype(x.dtype if out_dtype is None else out_dtype)

    # Channels-last for the kernel (C on the 128-lane axis).
    x_nlc = jnp.transpose(x, (0, 2, 1))  # (B, L, C_in)

    # Pad L to a sublane multiple so the in-kernel (TB,L,C)<->(TB*L,C) reshapes are
    # layout-free (padded positions are masked in-kernel and dropped here).
    sub = int(max(8, 32 // min(jnp.dtype(x.dtype).itemsize, out_dtype.itemsize)))
    L_pad = _round_up(L, sub)
    if L_pad != L:
        x_nlc = jnp.pad(x_nlc, ((0, 0), (0, L_pad - L), (0, 0)))

    # ~512 MXU rows per grid step amortizes the per-step fixed cost and the RHS
    # re-push; keep >= 2 grid steps when B > 1 so both v7x TensorCores get work.
    if batch_tile is None:
        batch_tile = max(1, min(B, 512 // L_pad))
        if B > 1 and pl.cdiv(B, batch_tile) < 2:
            batch_tile = pl.cdiv(B, 2)
    n_tiles = pl.cdiv(B, batch_tile)
    b_pad = n_tiles * batch_tile
    if b_pad != B:
        x_nlc = jnp.pad(x_nlc, ((0, b_pad - B), (0, 0), (0, 0)))

    # Weights in the MXU compute dtype (bf16 halves resident VMEM and runs at full
    # MXU rate; dots still accumulate in f32).  Weights/biases use constant
    # index_maps (resident) and are single-buffered: double-buffering them is waste.
    in_specs = [
        pl.BlockSpec(memory_space=pltpu.MemorySpace.SMEM),             # PReLU alphas
        pl.BlockSpec((batch_tile, L_pad, c_in), lambda i: (i, 0, 0)),  # x (streamed)
    ]
    operands = [alphas.astype(jnp.float32), x_nlc]
    packed = []
    for (w, b) in layers:
        k, ci, co = w.shape
        pack = (k * ci <= 128)   # fuse taps only while the combined depth is shallow
        packed.append(pack)
        w_c = w.astype(compute_dtype)
        if pack:
            w_c = w_c.reshape(k * ci, co)   # tap-major rows: [tap0 | tap1 | tap2]
            in_specs.append(pl.BlockSpec(w_c.shape, lambda i: (0, 0),
                                         pipeline_mode=pl.Buffered(1)))
        else:
            in_specs.append(pl.BlockSpec(w_c.shape, lambda i: (0, 0, 0),
                                         pipeline_mode=pl.Buffered(1)))
        b_c = b.astype(jnp.float32)
        in_specs.append(pl.BlockSpec(b_c.shape, lambda i: (0, 0),
                                     pipeline_mode=pl.Buffered(1)))
        operands += [w_c, b_c]

    # Explicit VMEM budget: resident weights (x1 buffer) + double-buffered streamed
    # IO blocks + f32 temporaries + headroom.
    rows = batch_tile * L_pad
    weight_bytes = sum(int(op.size) * op.dtype.itemsize for op in operands[2:])
    io_bytes = 2 * (batch_tile * L_pad * c_in * jnp.dtype(x.dtype).itemsize
                    + batch_tile * L_pad * c_out * out_dtype.itemsize)
    hidden = [c_in] + [w.shape[-1] for (w, _) in layers[:-1]]
    temp_bytes = rows * 4 * (2 * c_out + 6 * max(hidden))
    vmem_limit = int(weight_bytes + io_bytes + temp_bytes + (8 << 20))
    vmem_limit = min(max(vmem_limit, 32 << 20), 120 << 20)

    out = pl.pallas_call(
        _make_kernel(num_layers, batch_tile, L, L_pad, tuple(packed)),
        out_shape=jax.ShapeDtypeStruct((b_pad, L_pad, c_out), out_dtype),
        grid=(n_tiles,),
        in_specs=in_specs,
        out_specs=pl.BlockSpec((batch_tile, L_pad, c_out), lambda i: (i, 0, 0)),
        compiler_params=pltpu.CompilerParams(
            dimension_semantics=("parallel",),
            vmem_limit_bytes=vmem_limit),
    )(*operands)

    out = out[:B, :L]                     # drop batch / length padding
    return jnp.transpose(out, (0, 2, 1))  # back to (B, C_out, L)


def init_conv1d_params(key, num_layers=4, num_in_c=3, num_out_c=4096,
                       dtype=jnp.float32):
    """Deterministic synthetic init.

    Weights are stored as (K=3, C_in, C_out) -- transposed from PyTorch's
    (C_out, C_in, K) -- so each tap is a ready-to-use (C_in, C_out) matmul operand.
    """
    sizes = conv1d_sizes(num_layers, num_in_c, num_out_c)
    layers = []
    keys = jax.random.split(key, 2 * num_layers)
    for i in range(num_layers):
        c_i, c_o = sizes[i], sizes[i + 1]
        fan_in = 3 * c_i
        w = jax.random.normal(keys[2 * i], (3, c_i, c_o), dtype) * (1.0 / jnp.sqrt(fan_in))
        b = jax.random.normal(keys[2 * i + 1], (1, c_o), dtype) * 0.01
        layers.append((w, b))
    alphas = jnp.full((num_layers - 1,), 0.25, jnp.float32)  # nn.PReLU default init
    return {"layers": layers, "alphas": alphas}


def conv1d_reference(params, x):
    """Pure-JAX (XLA, f32) reference matching the PyTorch forward."""
    h = x
    layers = params["layers"]
    alphas = params["alphas"]
    n = len(layers)
    for i, (w, b) in enumerate(layers):
        rhs = jnp.transpose(w, (2, 1, 0))  # (C_out, C_in, K)
        h = jax.lax.conv_general_dilated(
            h, rhs, window_strides=(1,), padding=[(1, 1)],
            dimension_numbers=("NCH", "OIH", "NCH"))
        h = h + b.reshape(1, -1, 1)
        if i < n - 1:
            h = jnp.where(h > 0, h, alphas[i] * h)
    return h


if __name__ == "__main__":
    key = jax.random.PRNGKey(0)
    kp, kx = jax.random.split(key)

    # Small config consistent with the module: Conv_1D(num_layers=4, num_in_c=3,
    # num_out_c=512) -> channel sizes [3, 64, 128, 256, 512].
    num_layers, num_in_c, num_out_c = 4, 3, 512
    params = init_conv1d_params(kp, num_layers, num_in_c, num_out_c)

    B, L = 2, 16
    x = jax.random.normal(kx, (B, num_in_c, L), jnp.float32)

    out = conv1d_forward(params, x)           # bf16 MXU operands, f32 accumulation
    jax.block_until_ready(out)
    assert out.shape == (B, num_out_c, L)

    ref = conv1d_reference(params, x)         # pure f32 reference
    err = float(jnp.max(jnp.abs(out.astype(jnp.float32) - ref)))
    scale = float(jnp.max(jnp.abs(ref))) + 1e-6
    # Tolerance loosened vs the old f32-weight kernel: operands are bf16 on the MXU
    # (accumulation stays f32 via preferred_element_type).
    assert err <= 6e-2 * scale + 1e-3, f"kernel/ref mismatch: abs err {err} (scale {scale})"

    print("KERNEL_OK")
</pallas_src>

<mosaic_0001>
module attributes {stable_mosaic.version = 11 : i64} {
  func.func @kernel(%arg0: i32, %arg1: memref<3xf32, #tpu.memory_space<smem>>, %arg2: memref<1x16x3xf32, #tpu.memory_space<vmem>>, %arg3: memref<9x64xbf16, #tpu.memory_space<vmem>>, %arg4: memref<1x64xf32, #tpu.memory_space<vmem>>, %arg5: memref<3x64x128xbf16, #tpu.memory_space<vmem>>, %arg6: memref<1x128xf32, #tpu.memory_space<vmem>>, %arg7: memref<3x128x256xbf16, #tpu.memory_space<vmem>>, %arg8: memref<1x256xf32, #tpu.memory_space<vmem>>, %arg9: memref<3x256x512xbf16, #tpu.memory_space<vmem>>, %arg10: memref<1x512xf32, #tpu.memory_space<vmem>>, %arg11: memref<1x16x512xf32, #tpu.memory_space<vmem>>) attributes {dimension_semantics = [#tpu.dimension_semantics<parallel>], iteration_bounds = array<i64: 2>, scalar_prefetch = 0 : i64, scratch_operands = 0 : i64, tpu.core_type = #tpu.core_type<tc>, window_params = [{transform_indices = @transform_0, window_bounds = array<i64: 3>}, {transform_indices = @transform_1, window_bounds = array<i64: 1, 16, 3>}, {pipeline_mode = #tpu.pipeline_mode<synchronous>, transform_indices = @transform_2, window_bounds = array<i64: 9, 64>}, {pipeline_mode = #tpu.pipeline_mode<synchronous>, transform_indices = @transform_3, window_bounds = array<i64: 1, 64>}, {pipeline_mode = #tpu.pipeline_mode<synchronous>, transform_indices = @transform_4, window_bounds = array<i64: 3, 64, 128>}, {pipeline_mode = #tpu.pipeline_mode<synchronous>, transform_indices = @transform_5, window_bounds = array<i64: 1, 128>}, {pipeline_mode = #tpu.pipeline_mode<synchronous>, transform_indices = @transform_6, window_bounds = array<i64: 3, 128, 256>}, {pipeline_mode = #tpu.pipeline_mode<synchronous>, transform_indices = @transform_7, window_bounds = array<i64: 1, 256>}, {pipeline_mode = #tpu.pipeline_mode<synchronous>, transform_indices = @transform_8, window_bounds = array<i64: 3, 256, 512>}, {pipeline_mode = #tpu.pipeline_mode<synchronous>, transform_indices = @transform_9, window_bounds = array<i64: 1, 512>}, {transform_indices = @transform_10, window_bounds = array<i64: 1, 16, 512>}]} {
    %c0 = arith.constant 0 : index
    %c0_0 = arith.constant 0 : index
    %c0_1 = arith.constant 0 : index
    %0 = vector.load %arg2[%c0, %c0_0, %c0_1] : memref<1x16x3xf32, #tpu.memory_space<vmem>>, vector<1x16x3xf32>
    %1 = vector.shape_cast %0 : vector<1x16x3xf32> to vector<16x3xf32>
    %2 = tpu.iota {dimensions = array<i32: 0>} : vector<16x1xi32>
    %c16_i32 = arith.constant 16 : i32
    %c0_i32 = arith.constant 0 : i32
    %3 = arith.cmpi eq, %c16_i32, %c0_i32 : i32
    %c1_i32 = arith.constant 1 : i32
    %4 = arith.select %3, %c1_i32, %c16_i32 : i32
    %5 = vector.broadcast %4 : i32 to vector<16x1xi32>
    %6 = arith.remsi %2, %5 : vector<16x1xi32>
    %c0_i32_2 = arith.constant 0 : i32
    %7 = vector.broadcast %c0_i32_2 : i32 to vector<16x1xi32>
    %8 = arith.cmpi ne, %6, %7 : vector<16x1xi32>
    %c0_i32_3 = arith.constant 0 : i32
    %9 = vector.broadcast %c0_i32_3 : i32 to vector<16x1xi32>
    %10 = arith.cmpi slt, %6, %9 : vector<16x1xi32>
    %c0_i32_4 = arith.constant 0 : i32
    %11 = arith.cmpi slt, %4, %c0_i32_4 : i32
    %12 = vector.broadcast %11 : i1 to vector<16x1xi1>
    %13 = vector.broadcast %12 : vector<16x1xi1> to vector<16x1xi1>
    %14 = arith.xori %10, %13 : vector<16x1xi1>
    %15 = arith.andi %14, %8 : vector<16x1xi1>
    %16 = vector.broadcast %4 : i32 to vector<16x1xi32>
    %17 = arith.addi %6, %16 : vector<16x1xi32>
    %18 = arith.select %15, %17, %6 : vector<16x1xi1>, vector<16x1xi32>
    %c0_i32_5 = arith.constant 0 : i32
    %19 = vector.broadcast %c0_i32_5 : i32 to vector<16x1xi32>
    %20 = arith.cmpi ne, %18, %19 : vector<16x1xi32>
    %c15_i32 = arith.constant 15 : i32
    %21 = vector.broadcast %c15_i32 : i32 to vector<16x1xi32>
    %22 = arith.cmpi ne, %18, %21 : vector<16x1xi32>
    %c1_i32_6 = arith.constant 1 : i32
    %23 = tpu.dynamic_rotate %1 by %c1_i32_6 dim 0 : vector<16x3xf32>, i32 -> vector<16x3xf32>
    %cst = arith.constant 0.000000e+00 : f32
    %24 = vector.shape_cast %20 : vector<16x1xi1> to vector<16x1xi1>
    %25 = vector.broadcast %24 : vector<16x1xi1> to vector<16x3xi1>
    %26 = vector.broadcast %cst : f32 to vector<16x3xf32>
    %27 = arith.select %25, %23, %26 : vector<16x3xi1>, vector<16x3xf32>
    %c15_i32_7 = arith.constant 15 : i32
    %28 = tpu.dynamic_rotate %1 by %c15_i32_7 dim 0 : vector<16x3xf32>, i32 -> vector<16x3xf32>
    %cst_8 = arith.constant 0.000000e+00 : f32
    %29 = vector.shape_cast %22 : vector<16x1xi1> to vector<16x1xi1>
    %30 = vector.broadcast %29 : vector<16x1xi1> to vector<16x3xi1>
    %31 = vector.broadcast %cst_8 : f32 to vector<16x3xf32>
    %32 = arith.select %30, %28, %31 : vector<16x3xi1>, vector<16x3xf32>
    %33 = tpu.concatenate %27, %1, %32 in 1 : vector<16x3xf32>, vector<16x3xf32>, vector<16x3xf32> -> vector<16x9xf32>
    %34 = arith.truncf %33 : vector<16x9xf32> to vector<16x9xbf16>
    %c0_9 = arith.constant 0 : index
    %c0_10 = arith.constant 0 : index
    %35 = vector.load %arg3[%c0_9, %c0_10] : memref<9x64xbf16, #tpu.memory_space<vmem>>, vector<9x64xbf16>
    %cst_11 = arith.constant dense<0.000000e+00> : vector<16x64xf32>
    %36 = tpu.matmul %34, %35, %cst_11 {dimension_numbers = #tpu.dot_dimension_numbers<[1], [0], [0], [1], [0, 0, 1, 1], [], []>} : vector<16x9xbf16>, vector<9x64xbf16>, vector<16x64xf32> -> vector<16x64xf32>
    %c0_12 = arith.constant 0 : index
    %c0_13 = arith.constant 0 : index
    %37 = vector.load %arg4[%c0_12, %c0_13] : memref<1x64xf32, #tpu.memory_space<vmem>>, vector<1x64xf32>
    %38 = vector.broadcast %37 : vector<1x64xf32> to vector<16x64xf32>
    %39 = arith.addf %36, %38 : vector<16x64xf32>
    %c0_14 = arith.constant 0 : index
    %40 = memref.load %arg1[%c0_14] : memref<3xf32, #tpu.memory_space<smem>>
    %cst_15 = arith.constant 0.000000e+00 : f32
    %41 = vector.broadcast %cst_15 : f32 to vector<16x64xf32>
    %42 = arith.cmpf ogt, %39, %41 : vector<16x64xf32>
    %43 = vector.broadcast %40 : f32 to vector<16x64xf32>
    %44 = arith.mulf %43, %39 : vector<16x64xf32>
    %45 = arith.select %42, %39, %44 : vector<16x64xi1>, vector<16x64xf32>
    %c1_i32_16 = arith.constant 1 : i32
    %46 = tpu.dynamic_rotate %45 by %c1_i32_16 dim 0 : vector<16x64xf32>, i32 -> vector<16x64xf32>
    %cst_17 = arith.constant 0.000000e+00 : f32
    %47 = vector.shape_cast %20 : vector<16x1xi1> to vector<16x1xi1>
    %48 = vector.broadcast %47 : vector<16x1xi1> to vector<16x64xi1>
    %49 = vector.broadcast %cst_17 : f32 to vector<16x64xf32>
    %50 = arith.select %48, %46, %49 : vector<16x64xi1>, vector<16x64xf32>
    %c15_i32_18 = arith.constant 15 : i32
    %51 = tpu.dynamic_rotate %45 by %c15_i32_18 dim 0 : vector<16x64xf32>, i32 -> vector<16x64xf32>
    %cst_19 = arith.constant 0.000000e+00 : f32
    %52 = vector.shape_cast %22 : vector<16x1xi1> to vector<16x1xi1>
    %53 = vector.broadcast %52 : vector<16x1xi1> to vector<16x64xi1>
    %54 = vector.broadcast %cst_19 : f32 to vector<16x64xf32>
    %55 = arith.select %53, %51, %54 : vector<16x64xi1>, vector<16x64xf32>
    %56 = arith.truncf %50 : vector<16x64xf32> to vector<16x64xbf16>
    %c0_20 = arith.constant 0 : index
    %c0_21 = arith.constant 0 : index
    %c0_22 = arith.constant 0 : index
    %57 = vector.load %arg5[%c0_20, %c0_21, %c0_22] : memref<3x64x128xbf16, #tpu.memory_space<vmem>>, vector<1x64x128xbf16>
    %58 = vector.shape_cast %57 : vector<1x64x128xbf16> to vector<64x128xbf16>
    %cst_23 = arith.constant dense<0.000000e+00> : vector<16x128xf32>
    %59 = tpu.matmul %56, %58, %cst_23 {dimension_numbers = #tpu.dot_dimension_numbers<[1], [0], [0], [1], [0, 0, 1, 1], [], []>} : vector<16x64xbf16>, vector<64x128xbf16>, vector<16x128xf32> -> vector<16x128xf32>
    %60 = arith.truncf %45 : vector<16x64xf32> to vector<16x64xbf16>
    %c1 = arith.constant 1 : index
    %c0_24 = arith.constant 0 : index
    %c0_25 = arith.constant 0 : index
    %61 = vector.load %arg5[%c1, %c0_24, %c0_25] : memref<3x64x128xbf16, #tpu.memory_space<vmem>>, vector<1x64x128xbf16>
    %62 = vector.shape_cast %61 : vector<1x64x128xbf16> to vector<64x128xbf16>
    %cst_26 = arith.constant dense<0.000000e+00> : vector<16x128xf32>
    %63 = tpu.matmul %60, %62, %cst_26 {dimension_numbers = #tpu.dot_dimension_numbers<[1], [0], [0], [1], [0, 0, 1, 1], [], []>} : vector<16x64xbf16>, vector<64x128xbf16>, vector<16x128xf32> -> vector<16x128xf32>
    %64 = arith.addf %59, %63 : vector<16x128xf32>
    %65 = arith.truncf %55 : vector<16x64xf32> to vector<16x64xbf16>
    %c2 = arith.constant 2 : index
    %c0_27 = arith.constant 0 : index
    %c0_28 = arith.constant 0 : index
    %66 = vector.load %arg5[%c2, %c0_27, %c0_28] : memref<3x64x128xbf16, #tpu.memory_space<vmem>>, vector<1x64x128xbf16>
    %67 = vector.shape_cast %66 : vector<1x64x128xbf16> to vector<64x128xbf16>
    %cst_29 = arith.constant dense<0.000000e+00> : vector<16x128xf32>
    %68 = tpu.matmul %65, %67, %cst_29 {dimension_numbers = #tpu.dot_dimension_numbers<[1], [0], [0], [1], [0, 0, 1, 1], [], []>} : vector<16x64xbf16>, vector<64x128xbf16>, vector<16x128xf32> -> vector<16x128xf32>
    %69 = arith.addf %64, %68 : vector<16x128xf32>
    %c0_30 = arith.constant 0 : index
    %c0_31 = arith.constant 0 : index
    %70 = vector.load %arg6[%c0_30, %c0_31] : memref<1x128xf32, #tpu.memory_space<vmem>>, vector<1x128xf32>
    %71 = vector.broadcast %70 : vector<1x128xf32> to vector<16x128xf32>
    %72 = arith.addf %69, %71 : vector<16x128xf32>
    %c1_32 = arith.constant 1 : index
    %73 = memref.load %arg1[%c1_32] : memref<3xf32, #tpu.memory_space<smem>>
    %cst_33 = arith.constant 0.000000e+00 : f32
    %74 = vector.broadcast %cst_33 : f32 to vector<16x128xf32>
    %75 = arith.cmpf ogt, %72, %74 : vector<16x128xf32>
    %76 = vector.broadcast %73 : f32 to vector<16x128xf32>
    %77 = arith.mulf %76, %72 : vector<16x128xf32>
    %78 = arith.select %75, %72, %77 : vector<16x128xi1>, vector<16x128xf32>
    %c1_i32_34 = arith.constant 1 : i32
    %79 = tpu.dynamic_rotate %78 by %c1_i32_34 dim 0 : vector<16x128xf32>, i32 -> vector<16x128xf32>
    %cst_35 = arith.constant 0.000000e+00 : f32
    %80 = vector.shape_cast %20 : vector<16x1xi1> to vector<16x1xi1>
    %81 = vector.broadcast %80 : vector<16x1xi1> to vector<16x128xi1>
    %82 = vector.broadcast %cst_35 : f32 to vector<16x128xf32>
    %83 = arith.select %81, %79, %82 : vector<16x128xi1>, vector<16x128xf32>
    %c15_i32_36 = arith.constant 15 : i32
    %84 = tpu.dynamic_rotate %78 by %c15_i32_36 dim 0 : vector<16x128xf32>, i32 -> vector<16x128xf32>
    %cst_37 = arith.constant 0.000000e+00 : f32
    %85 = vector.shape_cast %22 : vector<16x1xi1> to vector<16x1xi1>
    %86 = vector.broadcast %85 : vector<16x1xi1> to vector<16x128xi1>
    %87 = vector.broadcast %cst_37 : f32 to vector<16x128xf32>
    %88 = arith.select %86, %84, %87 : vector<16x128xi1>, vector<16x128xf32>
    %89 = arith.truncf %83 : vector<16x128xf32> to vector<16x128xbf16>
    %c0_38 = arith.constant 0 : index
    %c0_39 = arith.constant 0 : index
    %c0_40 = arith.constant 0 : index
    %90 = vector.load %arg7[%c0_38, %c0_39, %c0_40] : memref<3x128x256xbf16, #tpu.memory_space<vmem>>, vector<1x128x256xbf16>
    %91 = vector.shape_cast %90 : vector<1x128x256xbf16> to vector<128x256xbf16>
    %cst_41 = arith.constant dense<0.000000e+00> : vector<16x256xf32>
    %92 = tpu.matmul %89, %91, %cst_41 {dimension_numbers = #tpu.dot_dimension_numbers<[1], [0], [0], [1], [0, 0, 1, 1], [], []>} : vector<16x128xbf16>, vector<128x256xbf16>, vector<16x256xf32> -> vector<16x256xf32>
    %93 = arith.truncf %78 : vector<16x128xf32> to vector<16x128xbf16>
    %c1_42 = arith.constant 1 : index
    %c0_43 = arith.constant 0 : index
    %c0_44 = arith.constant 0 : index
    %94 = vector.load %arg7[%c1_42, %c0_43, %c0_44] : memref<3x128x256xbf16, #tpu.memory_space<vmem>>, vector<1x128x256xbf16>
    %95 = vector.shape_cast %94 : vector<1x128x256xbf16> to vector<128x256xbf16>
    %cst_45 = arith.constant dense<0.000000e+00> : vector<16x256xf32>
    %96 = tpu.matmul %93, %95, %cst_45 {dimension_numbers = #tpu.dot_dimension_numbers<[1], [0], [0], [1], [0, 0, 1, 1], [], []>} : vector<16x128xbf16>, vector<128x256xbf16>, vector<16x256xf32> -> vector<16x256xf32>
    %97 = arith.addf %92, %96 : vector<16x256xf32>
    %98 = arith.truncf %88 : vector<16x128xf32> to vector<16x128xbf16>
    %c2_46 = arith.constant 2 : index
    %c0_47 = arith.constant 0 : index
    %c0_48 = arith.constant 0 : index
    %99 = vector.load %arg7[%c2_46, %c0_47, %c0_48] : memref<3x128x256xbf16, #tpu.memory_space<vmem>>, vector<1x128x256xbf16>
    %100 = vector.shape_cast %99 : vector<1x128x256xbf16> to vector<128x256xbf16>
    %cst_49 = arith.constant dense<0.000000e+00> : vector<16x256xf32>
    %101 = tpu.matmul %98, %100, %cst_49 {dimension_numbers = #tpu.dot_dimension_numbers<[1], [0], [0], [1], [0, 0, 1, 1], [], []>} : vector<16x128xbf16>, vector<128x256xbf16>, vector<16x256xf32> -> vector<16x256xf32>
    %102 = arith.addf %97, %101 : vector<16x256xf32>
    %c0_50 = arith.constant 0 : index
    %c0_51 = arith.constant 0 : index
    %103 = vector.load %arg8[%c0_50, %c0_51] : memref<1x256xf32, #tpu.memory_space<vmem>>, vector<1x256xf32>
    %104 = vector.broadcast %103 : vector<1x256xf32> to vector<16x256xf32>
    %105 = arith.addf %102, %104 : vector<16x256xf32>
    %c2_52 = arith.constant 2 : index
    %106 = memref.load %arg1[%c2_52] : memref<3xf32, #tpu.memory_space<smem>>
    %cst_53 = arith.constant 0.000000e+00 : f32
    %107 = vector.broadcast %cst_53 : f32 to vector<16x256xf32>
    %108 = arith.cmpf ogt, %105, %107 : vector<16x256xf32>
    %109 = vector.broadcast %106 : f32 to vector<16x256xf32>
    %110 = arith.mulf %109, %105 : vector<16x256xf32>
    %111 = arith.select %108, %105, %110 : vector<16x256xi1>, vector<16x256xf32>
    %c1_i32_54 = arith.constant 1 : i32
    %112 = tpu.dynamic_rotate %111 by %c1_i32_54 dim 0 : vector<16x256xf32>, i32 -> vector<16x256xf32>
    %cst_55 = arith.constant 0.000000e+00 : f32
    %113 = vector.shape_cast %20 : vector<16x1xi1> to vector<16x1xi1>
    %114 = vector.broadcast %113 : vector<16x1xi1> to vector<16x256xi1>
    %115 = vector.broadcast %cst_55 : f32 to vector<16x256xf32>
    %116 = arith.select %114, %112, %115 : vector<16x256xi1>, vector<16x256xf32>
    %c15_i32_56 = arith.constant 15 : i32
    %117 = tpu.dynamic_rotate %111 by %c15_i32_56 dim 0 : vector<16x256xf32>, i32 -> vector<16x256xf32>
    %cst_57 = arith.constant 0.000000e+00 : f32
    %118 = vector.shape_cast %22 : vector<16x1xi1> to vector<16x1xi1>
    %119 = vector.broadcast %118 : vector<16x1xi1> to vector<16x256xi1>
    %120 = vector.broadcast %cst_57 : f32 to vector<16x256xf32>
    %121 = arith.select %119, %117, %120 : vector<16x256xi1>, vector<16x256xf32>
    %122 = arith.truncf %116 : vector<16x256xf32> to vector<16x256xbf16>
    %c0_58 = arith.constant 0 : index
    %c0_59 = arith.constant 0 : index
    %c0_60 = arith.constant 0 : index
    %123 = vector.load %arg9[%c0_58, %c0_59, %c0_60] : memref<3x256x512xbf16, #tpu.memory_space<vmem>>, vector<1x256x512xbf16>
    %124 = vector.shape_cast %123 : vector<1x256x512xbf16> to vector<256x512xbf16>
    %cst_61 = arith.constant dense<0.000000e+00> : vector<16x512xf32>
    %125 = tpu.matmul %122, %124, %cst_61 {dimension_numbers = #tpu.dot_dimension_numbers<[1], [0], [0], [1], [0, 0, 1, 1], [], []>} : vector<16x256xbf16>, vector<256x512xbf16>, vector<16x512xf32> -> vector<16x512xf32>
    %126 = arith.truncf %111 : vector<16x256xf32> to vector<16x256xbf16>
    %c1_62 = arith.constant 1 : index
    %c0_63 = arith.constant 0 : index
    %c0_64 = arith.constant 0 : index
    %127 = vector.load %arg9[%c1_62, %c0_63, %c0_64] : memref<3x256x512xbf16, #tpu.memory_space<vmem>>, vector<1x256x512xbf16>
    %128 = vector.shape_cast %127 : vector<1x256x512xbf16> to vector<256x512xbf16>
    %cst_65 = arith.constant dense<0.000000e+00> : vector<16x512xf32>
    %129 = tpu.matmul %126, %128, %cst_65 {dimension_numbers = #tpu.dot_dimension_numbers<[1], [0], [0], [1], [0, 0, 1, 1], [], []>} : vector<16x256xbf16>, vector<256x512xbf16>, vector<16x512xf32> -> vector<16x512xf32>
    %130 = arith.addf %125, %129 : vector<16x512xf32>
    %131 = arith.truncf %121 : vector<16x256xf32> to vector<16x256xbf16>
    %c2_66 = arith.constant 2 : index
    %c0_67 = arith.constant 0 : index
    %c0_68 = arith.constant 0 : index
    %132 = vector.load %arg9[%c2_66, %c0_67, %c0_68] : memref<3x256x512xbf16, #tpu.memory_space<vmem>>, vector<1x256x512xbf16>
    %133 = vector.shape_cast %132 : vector<1x256x512xbf16> to vector<256x512xbf16>
    %cst_69 = arith.constant dense<0.000000e+00> : vector<16x512xf32>
    %134 = tpu.matmul %131, %133, %cst_69 {dimension_numbers = #tpu.dot_dimension_numbers<[1], [0], [0], [1], [0, 0, 1, 1], [], []>} : vector<16x256xbf16>, vector<256x512xbf16>, vector<16x512xf32> -> vector<16x512xf32>
    %135 = arith.addf %130, %134 : vector<16x512xf32>
    %c0_70 = arith.constant 0 : index
    %c0_71 = arith.constant 0 : index
    %136 = vector.load %arg10[%c0_70, %c0_71] : memref<1x512xf32, #tpu.memory_space<vmem>>, vector<1x512xf32>
    %137 = vector.broadcast %136 : vector<1x512xf32> to vector<16x512xf32>
    %138 = arith.addf %135, %137 : vector<16x512xf32>
    %139 = vector.shape_cast %138 : vector<16x512xf32> to vector<1x16x512xf32>
    %c0_72 = arith.constant 0 : index
    %c0_73 = arith.constant 0 : index
    %c0_74 = arith.constant 0 : index
    %140 = vector.load %arg11[%c0_72, %c0_73, %c0_74] : memref<1x16x512xf32, #tpu.memory_space<vmem>>, vector<1x16x512xf32>
    tpu.vector_store %arg11[%c0_72, %c0_73, %c0_74], %139 {strides = array<i32>} : memref<1x16x512xf32, #tpu.memory_space<vmem>>, vector<1x16x512xf32>,
    return
  }
  func.func @transform_0(%arg0: i32) -> i32 {
    %c0_i32 = arith.constant 0 : i32
    %c0_i32_0 = arith.constant 0 : i32
    return %c0_i32 : i32
  }
  func.func @transform_1(%arg0: i32) -> (i32, i32, i32) {
    %c0_i32 = arith.constant 0 : i32
    %c0_i32_0 = arith.constant 0 : i32
    %c0_i32_1 = arith.constant 0 : i32
    return %arg0, %c0_i32, %c0_i32_0 : i32, i32, i32
  }
  func.func @transform_2(%arg0: i32) -> (i32, i32) {
    %c0_i32 = arith.constant 0 : i32
    %c0_i32_0 = arith.constant 0 : i32
    %c0_i32_1 = arith.constant 0 : i32
    return %c0_i32, %c0_i32_0 : i32, i32
  }
  func.func @transform_3(%arg0: i32) -> (i32, i32) {
    %c0_i32 = arith.constant 0 : i32
    %c0_i32_0 = arith.constant 0 : i32
    %c0_i32_1 = arith.constant 0 : i32
    return %c0_i32, %c0_i32_0 : i32, i32
  }
  func.func @transform_4(%arg0: i32) -> (i32, i32, i32) {
    %c0_i32 = arith.constant 0 : i32
    %c0_i32_0 = arith.constant 0 : i32
    %c0_i32_1 = arith.constant 0 : i32
    %c0_i32_2 = arith.constant 0 : i32
    return %c0_i32, %c0_i32_0, %c0_i32_1 : i32, i32, i32
  }
  func.func @transform_5(%arg0: i32) -> (i32, i32) {
    %c0_i32 = arith.constant 0 : i32
    %c0_i32_0 = arith.constant 0 : i32
    %c0_i32_1 = arith.constant 0 : i32
    return %c0_i32, %c0_i32_0 : i32, i32
  }
  func.func @transform_6(%arg0: i32) -> (i32, i32, i32) {
    %c0_i32 = arith.constant 0 : i32
    %c0_i32_0 = arith.constant 0 : i32
    %c0_i32_1 = arith.constant 0 : i32
    %c0_i32_2 = arith.constant 0 : i32
    return %c0_i32, %c0_i32_0, %c0_i32_1 : i32, i32, i32
  }
  func.func @transform_7(%arg0: i32) -> (i32, i32) {
    %c0_i32 = arith.constant 0 : i32
    %c0_i32_0 = arith.constant 0 : i32
    %c0_i32_1 = arith.constant 0 : i32
    return %c0_i32, %c0_i32_0 : i32, i32
  }
  func.func @transform_8(%arg0: i32) -> (i32, i32, i32) {
    %c0_i32 = arith.constant 0 : i32
    %c0_i32_0 = arith.constant 0 : i32
    %c0_i32_1 = arith.constant 0 : i32
    %c0_i32_2 = arith.constant 0 : i32
    return %c0_i32, %c0_i32_0, %c0_i32_1 : i32, i32, i32
  }
  func.func @transform_9(%arg0: i32) -> (i32, i32) {
    %c0_i32 = arith.constant 0 : i32
    %c0_i32_0 = arith.constant 0 : i32
    %c0_i32_1 = arith.constant 0 : i32
    return %c0_i32, %c0_i32_0 : i32, i32
  }
  func.func @transform_10(%arg0: i32) -> (i32, i32, i32) {
    %c0_i32 = arith.constant 0 : i32
    %c0_i32_0 = arith.constant 0 : i32
    %c0_i32_1 = arith.constant 0 : i32
    return %arg0, %c0_i32, %c0_i32_0 : i32, i32, i32
  }
}

</mosaic_0001>

<bundles_post_ra>
// kernel: tpu_custom_call.1
= control target key start
LH: loop header
LB: loop body
LE: loop exit
PB: predicated region body
PF: predicated region fallthrough
CT: control target
= control target key end

     0   :  { %s4419_s0 = inlined_call_operand.vmem [shape: f32[3], index: 0, kind: input, shape index: {}]   ;;  %s4420_s1 = inlined_call_operand.vmem [shape: f32[2,16,3], index: 1, kind: input, shape index: {}]   ;;  %s4421_s2 = inlined_call_operand.vmem [shape: bf16[9,64], index: 2, kind: input, shape index: {}]   ;;  %s4422_s3 = inlined_call_operand.vmem [shape: f32[1,64], index: 3, kind: input, shape index: {}]   ;;  %s4423_s4 = inlined_call_operand.hbm [shape: bf16[3,64,128], index: 4, kind: input, shape index: {}]   ;;  %s4424_s5 = inlined_call_operand.vmem [shape: f32[1,128], index: 5, kind: input, shape index: {}]   ;;  %s4425_s6 = inlined_call_operand.hbm [shape: bf16[3,128,256], index: 6, kind: input, shape index: {}]   ;;  %s4426_s7 = inlined_call_operand.vmem [shape: f32[1,256], index: 7, kind: input, shape index: {}]   ;;  %s4427_s8 = inlined_call_operand.hbm [shape: bf16[3,256,512], index: 8, kind: input, shape index: {}]   ;;  %s4428_s9 = inlined_call_operand.vmem [shape: f32[1,512], index: 9, kind: input, shape index: {}]   ;;  %s4429_s10 = inlined_call_operand.hbm [shape: f32[2,16,512], index: 10, kind: output, shape index: {}]  }
   0x1   :  { %4437 = sst [smem:[#allocation19_spill]] %s4419_s0 }
   0x2   :  { %4438 = sst [smem:[#allocation20_spill]] %s4425_s6 }
   0x3   :  { %15 = vsyncpa [#allocation5], 0 }
   0x4   :  { %16 = vsyncpa [#allocation3], 0 }
   0x5   :  { %17 = vsyncpa [#allocation8], 0 }
   0x6   :  { %18 = vsyncpa [#allocation4], 0 }
   0x7   :  { %20 = vsyncpa [#allocation4 + $0x1], 0  ;;  %s4033_s13 = smov 0   ;;  %s4035_s14 = smov 0  }
   0x8   :  { %s4037_s15 = smov 0   ;;  %s4039_s16 = smov 0  }
   0x9 LB: > { %4439 = sst [smem:[#allocation15_spill]] %s3952_s15  ;;  %s4054_s17 = sadd.s32 4294967295, %s3956_s16   ;;  %s3956_s16 = sphi %s4039_s16, %s4468_s16   ;;  %s3952_s15 = sphi %s4037_s15, %s4470_s15   ;;  %s3948_s14 = sphi %s4035_s14, %s4472_s14   ;;  %s3944_s13 = sphi %s4033_s13, %s4471_s13  }
   0xa   : > { %s2909_s18 = sadd.s32 4294967294, %s3956_s16   ;;  %s4058_s19 = sadd.s32 1, %s3956_s16  }
   0xb   : > { %4440 = sst [smem:[#allocation16_spill]] %s4058_s19  ;;  %s248_s20 = sadd.s32 1, %s3952_s15 }
   0xc   : > { %s245_s21 = ssub.s32 %s3956_s16, %s4058_s19  ;;  %p258_p0 = scmp.ne.s32.totalorder %s3952_s15, %s3948_s14 }
   0xd   : > { %p246_p1 = scmp.eq.s32.totalorder %s245_s21, 0  ;;  %p259_p2 = scmp.eq.s32.totalorder %s4054_s17, 1 }
   0xe   : > { %p264_p3 = scmp.ne.s32.totalorder %s3948_s14, %s3944_s13  ;;  %p265_p4 = scmp.eq.s32.totalorder %s2909_s18, 1 }
   0xf   : > { %s4069_s22 = scalar_select %p246_p1, %s3952_s15, %s248_s20  }
  0x10   : > { %p4071_p5 = por %p259_p2, %p258_p0  ;;  %p4075_p6 = por %p265_p4, %p264_p3 }
  0x11   : > { %4441 = sst [smem:[#allocation17_spill]] %s4069_s22  ;;  %p2910_p7 = scmp.ge.s32.totalorder %s3956_s16, 1 }
  0x12   : > { %s4442_s23 = scalar_select %p4071_p5, 1, 0 }
  0x13   : > { %s4443_s24 = scalar_select %p4075_p6, 1, 0 }
  0x14   : > { %p272_p8 = scmp.lt.s32.totalorder %s3956_s16, 3  ;;  %p4431_p9 = scmp.eq.s32.totalorder %s4054_s17, 0 }
  0x15   : > { %4444 = sst [smem:[#allocation18_spill]] %s4443_s24  ;;  %s3958_s26 = smov [#allocation7]  }
  0x16   : > { %p4082_p10 = pnand %p2910_p7, %p272_p8  ;;  %s317_s27 = sshll.u32 %s3958_s26, 4  ;;  %s318_s27 = int_to_ptr.vmem [resolvable:$true] %s317_s27 }
  0x17   : > { %s4446_s0 = sld [smem:[#allocation19_spill]]  ;;  %s3959_s12 = smov [#allocation6]  }
  0x18   : > { %s4445_s25 = scalar_select %p4082_p10, 1, 0 }
  0x19   : > { %p3323_p11 = pneg %p4082_p10  ;;  %s4099_s18 = sshll.u32 %s3959_s12, 4  ;;  %s302_s18 = int_to_ptr.vmem [resolvable:$true] %s4099_s18 }
  0x1a   : > { %s4448_s6 = sld [smem:[#allocation20_spill]] }
  0x1b   : > { %p4093_p12 = pnand %p4431_p9, %p3323_p11 }
  0x1d   : > { %s285_s30 = sshll.u32 %s4446_s0, 4  ;;  %p4109_p0 = pneg %p4093_p12  ;;  %s4097_s30 = int_to_ptr.vmem [resolvable:$true] %s285_s30 }
  0x20   : > { %s3783_s26 = scalar_lea.hbm %s4448_s6, 6144 }
  0x21   : > { %p3784_p13 = scmp.ne.s32.totalorder %s4448_s6, %s3783_s26  ;;  %p3790_p3 = scmp.lt.u32.totalorder %s3783_s26, %s4448_s6 }
  0x23   : > { %p3786_p1 = pnand %p4109_p0, %p3784_p13 }
  0x25   : > { %p3787_p2 = pneg %p3786_p1 }
  0x27   : > { %p3792_p4 = pnand %p3790_p3, %p3787_p2 }
  0x29   : > { %3795 = shalt.err (!%p3792_p4)
}
  0x2a   : > { %s3796_s20 = scalar_lea.vmem %s318_s27, 6144  ;;  %p3804_p9 = scmp.lt.s32.totalorder %s318_s27, %s318_s27 }
  0x2b   : > { %p3797_p7 = scmp.ne.s32.totalorder %s318_s27, %s3796_s20  ;;  %p3805_p6 = scmp.lt.s32.totalorder %s3796_s20, %s3796_s20 }
  0x2d   : > { %p3799_p8 = pnand %p3797_p7, %p4109_p0  ;;  %p3806_p5 = por %p3805_p6, %p3804_p9 }
  0x2f   : > { %p3800_p11 = pneg %p3799_p8 }
  0x31   : > { %p3807_p10 = pnand %p3806_p5, %p3800_p11 }
  0x33   : > { %3810 = shalt.err (!%p3807_p10)
}
  0x34   : > { %s3960_s15 = smov 128   ;;  %s3961_s22 = smov 8  }
  0x35   : > { %3332 = dma.hbm_to_vmem [thread:$0]  (!%p4093_p12), %s4448_s6, 6144, %s318_s27, [#allocation8], %s3960_s15, %s3960_s15, %s3961_s22  }
  0x36   : > { %s3811_s29 = scalar_lea.vmem %s4097_s30, 16  ;;  %p3819_p5 = scmp.lt.s32.totalorder %s4097_s30, %s4097_s30 }
  0x37   : > { %p3812_p13 = scmp.ne.s32.totalorder %s4097_s30, %s3811_s29  ;;  %p3820_p6 = scmp.lt.s32.totalorder %s3811_s29, %s3811_s29 }
  0x39   : > { %p3814_p1 = pnand %p3812_p13, %p4109_p0  ;;  %p3821_p9 = por %p3820_p6, %p3819_p5 }
  0x3b   : > { %p3815_p2 = pneg %p3814_p1 }
  0x3d   : > { %p3822_p10 = pnand %p3821_p9, %p3815_p2 }
  0x3f   : > { %3825 = shalt.err (!%p3822_p10)
}
  0x40   : > { %s3962_s12 = smov [#allocation2]   ;;  %s3826_s15 = scalar_lea.hbm %s4423_s4, 1536 }
  0x41   : > { %3326 = dma.vmem_to_smem (!%p4093_p12), %s4097_s30, 16, %s3962_s12, [#allocation5]  }
  0x42   : > { %p3827_p3 = scmp.ne.s32.totalorder %s4423_s4, %s3826_s15  ;;  %p3833_p8 = scmp.lt.u32.totalorder %s3826_s15, %s4423_s4 }
  0x44   : > { %p3829_p4 = pnand %p3827_p3, %p4109_p0 }
  0x46   : > { %p3830_p7 = pneg %p3829_p4 }
  0x48   : > { %p3835_p11 = pnand %p3833_p8, %p3830_p7 }
  0x4a   : > { %3838 = shalt.err (!%p3835_p11)
}
  0x4b   : > { %s3839_s0 = scalar_lea.vmem %s302_s18, 1536  ;;  %p3847_p5 = scmp.lt.s32.totalorder %s302_s18, %s302_s18 }
  0x4c   : > { %p3840_p13 = scmp.ne.s32.totalorder %s302_s18, %s3839_s0  ;;  %p3848_p6 = scmp.lt.s32.totalorder %s3839_s0, %s3839_s0 }
  0x4e   : > { %p3842_p1 = pnand %p3840_p13, %p4109_p0  ;;  %p3849_p9 = por %p3848_p6, %p3847_p5 }
  0x50   : > { %p3843_p2 = pneg %p3842_p1 }
  0x52   : > { %p3850_p10 = pnand %p3849_p9, %p3843_p2 }
  0x54   : > { %3853 = shalt.err (!%p3850_p10)
}
  0x55   : > { %s3963_s30 = smov 64   ;;  %s3964_s12 = smov 4  }
  0x56   : > { %3329 = dma.hbm_to_vmem [thread:$0]  (!%p4093_p12), %s4423_s4, 1536, %s302_s18, [#allocation3], %s3963_s30, %s3963_s30, %s3964_s12  }
  0x57   : > { %s3965_s15 = smov [#allocation9]   ;;  %s3854_s29 = scalar_lea.hbm %s4427_s8, 24576 }
  0x58   : > { %s333_s22 = sshll.u32 %s3965_s15, 4  ;;  %p3855_p3 = scmp.ne.s32.totalorder %s4427_s8, %s3854_s29  ;;  %s334_s22 = int_to_ptr.vmem [resolvable:$true] %s333_s22 }
  0x59   : > { %p3861_p8 = scmp.lt.u32.totalorder %s3854_s29, %s4427_s8 }
  0x5a   : > { %p3857_p4 = pnand %p3855_p3, %p4109_p0 }
  0x5c   : > { %p3858_p7 = pneg %p3857_p4 }
  0x5e   : > { %p3863_p11 = pnand %p3861_p8, %p3858_p7 }
  0x60   : > { %3866 = shalt.err (!%p3863_p11)
}
  0x61   : > { %s3867_s18 = scalar_lea.vmem %s334_s22, 24576  ;;  %p3875_p5 = scmp.lt.s32.totalorder %s334_s22, %s334_s22 }
  0x62   : > { %p3868_p13 = scmp.ne.s32.totalorder %s334_s22, %s3867_s18  ;;  %p3876_p6 = scmp.lt.s32.totalorder %s3867_s18, %s3867_s18 }
  0x64   : > { %p3870_p1 = pnand %p3868_p13, %p4109_p0  ;;  %p3877_p9 = por %p3876_p6, %p3875_p5 }
  0x66   : > { %p3871_p2 = pneg %p3870_p1 }
  0x68   : > { %p3878_p10 = pnand %p3877_p9, %p3871_p2 }
  0x6a   : > { %3881 = shalt.err (!%p3878_p10)
}
  0x6b   : > { %s3966_s6 = smov 256   ;;  %s3967_s30 = smov 16  }
  0x6c   : > { %3335 = dma.hbm_to_vmem [thread:$0]  (!%p4093_p12), %s4427_s8, 24576, %s334_s22, [#allocation8], %s3966_s6, %s3966_s6, %s3967_s30  }
  0x6d   : > { %p4450_p3 = scmp.ne.s32.totalorder %s4445_s25, 0 }
  0x6e   : > { %p4451_p4 = scmp.eq.s32.totalorder (!%p4450_p3), %s4054_s17, 0 }
  0x6f   : > { %360 = sbr.rel (%p4450_p3) target bundleno = 1440 (0x5a0), region = 60 }
  0x76   : > { %3927 = dma.done.wait (%p4451_p4), [#allocation5], 16   ;;  %p4452_p0 = pmov %p4451_p4 }
  0x78   : > { %3929 = vsyncadd (%p4452_p0), [#allocation5], 4294967280  ;;  %p4453_p7 = pmov %p4452_p0 }
  0x79   : > { %p4454_p8 = pmov %p4452_p0 }
  0x7a   : > { %3931 = dma.done.wait (%p4453_p7), [#allocation3], 1536  }
  0x7b   : > { %3933 = vsyncadd (%p4454_p8), [#allocation3], 4294965760  ;;  %p4455_p11 = pmov %p4452_p0 }
  0x7c   : > { %p4456_p12 = pmov %p4452_p0 }
  0x7d   : > { %3935 = dma.done.wait (%p4455_p11), [#allocation8], 30720  }
  0x7e   : > { %3937 = vsyncadd (%p4456_p12), [#allocation8], 4294936576 }
  0x7f   : > { %378 = sfence }
  0x80   : > { %p411_p13 = scmp.lt.s32.totalorder %s4054_s17, 1  ;;  %v419_v0 = vlaneseq  ;;  %v3410_v1 = vld [vmem:[%s4421_s2] sm:$0x1f]   ;;  %v3968_v3 = vmov 0.0   ;;  %vm513_vm0 = vcmask 1043456   ;;  %vm514_vm1 = vcmask 1044480  }
  0x81   : > { %3239 = vmatprep.subr.bf16.mxu0 %v3968_v3  ;;  %3269 = vmatprep.subr.bf16.mxu1 %v3968_v3  ;;  %v3969_v4 = vmov 65535   ;;  %vm3970_vm4 = vmmov 0   ;;  %s3971_s22 = smov 3   ;;  %v3413_v23 = vld [vmem:[#allocation6 + $0x40] sm:$0xff]   ;;  %s3972_s21 = smov 6   ;;  %vm488_vm7 = vcmask 23552  }
  0x82   : > { %s412_s11 = scalar_select %p411_p13, %s4054_s17, 1  ;;  %v4190_v2 = vshrl.u32 %v419_v0, 7  ;;  %v515_v5 = vsel %vm513_vm0, 4294967295, %v3969_v4  ;;  %3241 = vmatprep.mubr.msk.bf16.mxu0 %vm3970_vm4, %v3968_v3  ;;  %3277 = vmatprep.mubr.msk.bf16.mxu1 %vm3970_vm4, %v3968_v3  ;;  %vm491_vm8 = vcmask 48128   ;;  %vm509_vm9 = vcmask 72704   ;;  %v3411_v38 = vld [vmem:[#allocation6 + $0x20] sm:$0xff]  }
  0x83   : > { %v516_v7 = vsel %vm514_vm1, %v515_v5, 0  ;;  %3270 = vmatpush3.bf16.msra.mxu1 %v3413_v23  ;;  %v3412_v40 = vld [vmem:[#allocation6 + $0x28] sm:$0xff]   ;;  %v3414_v41 = vld [vmem:[#allocation6 + $0x30] sm:$0xff]   ;;  %v3416_v43 = vld [vmem:[#allocation6 + $0x38] sm:$0xff]   ;;  %s561_s26 = sld [smem:[#allocation2]]  ;;  %vm624_vm12 = vcmask 523264  }
  0x84   : > { %s3220_s28 = sshll.u32 %s412_s11, 4  ;;  %v421_v6 = vadd.s32 8, %v4190_v2  ;;  %vm463_vm2 = vcmp.lt.s32.totalorder %v4190_v2, 7  ;;  %vm452_vm3 = vcmp.lt.s32.totalorder %v4190_v2, 1  ;;  %v518_v11 = vand.u32 %v3410_v1, %v516_v7  ;;  %3271 = vmatprep.subr.bf16.mxu1 %v3968_v3  ;;  %v3415_v42 = vld [vmem:[#allocation6 + $0x48] sm:$0xff]   ;;  %v3417_v44 = vld [vmem:[#allocation6 + $0x50] sm:$0xff]  }
  0x85   : > { %s415_s15 = scalar_lea.vmem %s4420_s1, %s3220_s28  ;;  %v426_v25 = vand.u32 15, %v4190_v2  ;;  %v3419_v45 = vld [vmem:[#allocation6 + $0x58] sm:$0xff]   ;;  %v2924_v46 = vld [vmem:[%s4422_s3] ss:$0 sm:$0xff]  ;;  %v3420_v7 = vld [vmem:[#allocation6 + $0x8] sm:$0xff]   ;;  %s2943_s18 = sld [smem:[#allocation2 + $0x1]] }
  0x86   : > { %v417_v8 = vld [vmem:[%s415_s15] sm:$0xff]  ;;  %v418_v9 = vld [vmem:[%s415_s15 + $0x8] sm:$0xff]  ;;  %v433_v10 = vand.u32 15, %v421_v6  ;;  %3240 = vmatpush3.bf16.msra.mxu0 %v518_v11  ;;  %v3421_v11 = vld [vmem:[#allocation6 + $0x10] sm:$0xff]   ;;  %vm3974_vm15 = vmmov 1   ;;  %s2998_s12 = sld [smem:[#allocation2 + $0x2]] }
  0x87   : > { %v451_v12 = vrot.slane %v418_v9, 7  ;;  %v462_v13 = vrot.slane %v418_v9, 1  ;;  %v3400_v14 = vpack.i.bf16 %v418_v9, %v417_v8  ;;  %v450_v15 = vrot.slane %v417_v8, 7  ;;  %3245 = vmatprep.subr.bf16.mxu0 %v3968_v3  ;;  %3272 = vmatpush3.bf16.msra.mxu1 %v3415_v42  ;;  %v3418_v59 = vld [vmem:[#allocation6] sm:$0xff]   ;;  %v3440_v23 = vld [vmem:[#allocation7 + $0xd4] ss:$8 sps:$4 sm:$0xff]  }
  0x88   : > { %v461_v16 = vrot.slane %v417_v8, 1  ;;  %vm4204_vm5 = vcmp.ne.s32.totalorder %v433_v10, 15  ;;  %vm4221_vm6 = vcmp.ne.s32.totalorder %v426_v25, 0  ;;  %3273 = vmatprep.subr.bf16.mxu1 %v3968_v3  ;;  %v3443_v25 = vld [vmem:[#allocation7 + $0xe4] ss:$8 sps:$4 sm:$0xff]   ;;  %s408_s25 = sand.u32 1, %s3948_s14  }
  0x89   : > { %3401 = vrot.lane.b32.xlu0 %v3400_v14, %s3971_s22  ;;  %v453_v18 = vsel %vm452_vm3, %v450_v15, %v451_v12  ;;  %v454_v19 = vsel %vm452_vm3, %v451_v12, %v450_v15  ;;  %v564_v48 = vstv %s561_s26  ;;  %v3422_v12 = vld [vmem:[#allocation6 + $0x18] sm:$0xff]   ;;  %v3423_v14 = vld [vmem:[#allocation7 + $0x80] ss:$8 sps:$4 sm:$0xff]   ;;  %vm4280_vm0 = vmpackc.low %vm3974_vm15, %vm4221_vm6  ;;  %s2921_s27 = sshll.u32 %s408_s25, 6  ;;  %s3221_s15 = sshll.u32 %s4054_s17, 10 }
  0x8a   : > { %v464_v20 = vsel %vm463_vm2, %v461_v16, %v462_v13  ;;  %v465_v21 = vsel %vm463_vm2, %v462_v13, %v461_v16  ;;  %v459_v30 = vsel %vm4221_vm6, %v454_v19, 0.0  ;;  %v3425_v13 = vld [vmem:[#allocation7 + $0x84] ss:$8 sps:$4 sm:$0xff]   ;;  %v3428_v15 = vld [vmem:[#allocation7 + $0x94] ss:$8 sps:$4 sm:$0xff]   ;;  %vm4290_vm1 = vmpackc.low %vm4204_vm5, %vm3974_vm15  ;;  %s410_s20 = scalar_lea.vmem [#allocation10], %s2921_s27  ;;  %s4372_s29 = scalar_lea.hbm %s4429_s10, %s3221_s15 }
  0x8b   : > { %v471_v22 = vsel %vm4204_vm5, %v465_v21, 0.0  ;;  %3274 = vmatpush3.bf16.msra.mxu1 %v3417_v44  ;;  %v3426_v16 = vld [vmem:[#allocation7 + $0x90] ss:$8 sps:$4 sm:$0xff]   ;;  %v3429_v19 = vld [vmem:[#allocation7 + $0xa0] ss:$8 sps:$4 sm:$0xff]   ;;  %s2804_s22 = sshll.u32 %s410_s20, 4  ;;  %s4374_s22 = int_to_ptr.vmem [resolvable:$true] %s2804_s22 }
  0x8c   : > { %v3405_v24 = vpack.i.bf16 %v471_v22, %v464_v20  ;;  %3275 = vmatprep.subr.bf16.mxu1 %v3968_v3  ;;  %v3432_v20 = vld [vmem:[#allocation7 + $0xb0] ss:$8 sps:$4 sm:$0xff]   ;;  %v3434_v21 = vld [vmem:[#allocation7 + $0xb4] ss:$8 sps:$4 sm:$0xff]   ;;  %v3437_v22 = vld [vmem:[#allocation7 + $0xc4] ss:$8 sps:$4 sm:$0xff]  }
  0x8d   : > { %v3528_v42 = vld [vmem:[#allocation9 + $0xa0] ss:$16 sps:$4 sm:$0xff]   ;;  %v3482_v27 = vld [vmem:[#allocation7 + $0x134] ss:$8 sps:$4 sm:$0xff]   ;;  %s4378_s17 = scalar_lea.sflag [#allocation4], %s408_s25  ;;  %s3882_s0 = scalar_lea.vmem %s4374_s22, 1024 }
  0x8e   : > { %3406 = vrot.lane.b32.xlu0 %v3405_v24, %s3972_s21  ;;  %v3438_v24 = vld [vmem:[#allocation7 + $0xd0] ss:$8 sps:$4 sm:$0xff]   ;;  %v3515_v17 = vld [vmem:[#allocation9 + $0x264] ss:$16 sps:$4 sm:$0xff]   ;;  %p3883_p1 = scmp.ne.s32.totalorder %s4374_s22, %s3882_s0  ;;  %p4465_p2 = scmp.ne.s32.totalorder %s4442_s23, 0 }
  0x8f   : > { %3276 = vmatpush3.bf16.msra.mxu1 %v3419_v45  ;;  %v3534_v44 = vld [vmem:[#allocation9 + $0xc0] ss:$16 sps:$4 sm:$0xff]   ;;  %v3536_v45 = vld [vmem:[#allocation9 + $0xc4] ss:$16 sps:$4 sm:$0xff]  }
  0x90   : > { %p3884_p5 = pnand %p3883_p1, %p4465_p2 }
  0x92   : > { %p3885_p6 = pneg %p3884_p5 }
  0xfb   : > { %v3402_v26 = vpop.permute.xlu0 %3401 }
  0xfc   : > { %v3404_v28 = vunpack.i.h.bf16 %v3402_v26  ;;  %v3403_v29 = vunpack.i.l.bf16 %v3402_v26  ;;  %v3441_v26 = vld [vmem:[#allocation7 + $0xe0] ss:$8 sps:$4 sm:$0xff]  }
  0xfe   : > { %v489_v34 = vsel %vm488_vm7, %v459_v30, %v3403_v29  ;;  %v490_v35 = vsel %vm488_vm7, %v453_v18, %v3404_v28  ;;  %v3431_v18 = vld [vmem:[#allocation7 + $0xa4] ss:$8 sps:$4 sm:$0xff]   ;;  %v3446_v28 = vld [vmem:[#allocation7 + $0xf4] ss:$8 sps:$4 sm:$0xff]   ;;  %v3444_v29 = vld [vmem:[#allocation7 + $0xf0] ss:$8 sps:$4 sm:$0xff]  }
  0xff   : > { %v3449_v30 = vld [vmem:[#allocation7 + $0x4] ss:$8 sps:$4 sm:$0xff]  }
 0x100   : > { %v3407_v31 = vpop.permute.xlu0 %3406 }
 0x101   : > { %v3409_v32 = vunpack.i.h.bf16 %v3407_v31  ;;  %v3408_v33 = vunpack.i.l.bf16 %v3407_v31  ;;  %v3973_v31 = vmov 0  }
 0x103   : > { %v492_v36 = vsel %vm491_vm8, %v489_v34, %v3408_v33  ;;  %v493_v37 = vsel %vm491_vm8, %v490_v35, %v3409_v32  ;;  %v3498_v32 = vld [vmem:[#allocation9] ss:$16 sps:$4 sm:$0xff]   ;;  %v3500_v33 = vld [vmem:[#allocation9 + $0x4] ss:$16 sps:$4 sm:$0xff]  }
 0x104   : > { %v494_v39 = vpack.c.bf16 %v493_v37, %v492_v36  ;;  %2185 = vmatprep.subr.bf16.mxu1 %v3500_v33  ;;  %v3504_v34 = vld [vmem:[#allocation9 + $0x20] ss:$16 sps:$4 sm:$0xff]   ;;  %v3506_v35 = vld [vmem:[#allocation9 + $0x24] ss:$16 sps:$4 sm:$0xff]  }
 0x105   : > { %v3510_v36 = vld [vmem:[#allocation9 + $0x40] ss:$16 sps:$4 sm:$0xff]   ;;  %v3512_v37 = vld [vmem:[#allocation9 + $0x44] ss:$16 sps:$4 sm:$0xff]  }
 0x106   : > { %3242 = vmatmul.mubr.msk.bf16.vlgmr.msra.gmra.mrb[0].mxu0 %vm509_vm9, %v494_v39  ;;  %v3518_v39 = vld [vmem:[#allocation9 + $0x64] ss:$16 sps:$4 sm:$0xff]   ;;  %v3450_v33 = vld [vmem:[#allocation7 + $0x10] ss:$8 sps:$4 sm:$0xff]  }
 0x107   : > { %3246 = vmatpush3.bf16.msra.mxu0 %v3411_v38  ;;  %3253 = vmatprep.mubr.msk.bf16.mxu0 %vm3970_vm4, %v3968_v3  ;;  %v3516_v38 = vld [vmem:[#allocation9 + $0x60] ss:$16 sps:$4 sm:$0xff]  }
 0x108   : > { %3247 = vmatprep.subr.bf16.mxu0 %v3968_v3 }
 0x10b   : > { %3248 = vmatpush3.bf16.msra.mxu0 %v3412_v40  ;;  %v3522_v40 = vld [vmem:[#allocation9 + $0x80] ss:$16 sps:$4 sm:$0xff]  }
 0x10c   : > { %3249 = vmatprep.subr.bf16.mxu0 %v3968_v3 }
 0x10f   : > { %3250 = vmatpush3.bf16.msra.mxu0 %v3414_v41  ;;  %v3524_v41 = vld [vmem:[#allocation9 + $0x84] ss:$16 sps:$4 sm:$0xff]  }
 0x110   : > { %3251 = vmatprep.subr.bf16.mxu0 %v3968_v3 }
 0x113   : > { %3252 = vmatpush3.bf16.msra.mxu0 %v3416_v43  ;;  %v3530_v43 = vld [vmem:[#allocation9 + $0xa4] ss:$16 sps:$4 sm:$0xff]  }
 0x114   : > { %3257 = vmatprep.subr.bf16.mxu0 %v3968_v3 }
 0x1d9   : > { %v554_v47 = vpop.f32.mrb[0].mxu0 }
 0x1da   : > { %v555_v49 = vadd.f32 %v2924_v46, %v554_v47  ;;  %v3243_v50 = vpop.f32.mrb[1].mxu0  ;;  %v3542_v47 = vld [vmem:[#allocation9 + $0xe4] ss:$16 sps:$4 sm:$0xff]  }
 0x1db   : > { %v557_v51 = vpop.f32.mrb[2].mxu0 }
 0x1dc   : > { %vm562_vm10 = vcmp.gt.f32.partialorder %v555_v49, 0.0  ;;  %v565_v52 = vmul.f32 %v564_v48, %v555_v49  ;;  %v558_v53 = vadd.f32 %v2924_v46, %v557_v51  ;;  %v3244_v54 = vpop.f32.mrb[3].mxu0  ;;  %v3540_v46 = vld [vmem:[#allocation9 + $0xe0] ss:$16 sps:$4 sm:$0xff]  }
 0x1dd   : > { %v3552_v54 = vld [vmem:[#allocation9 + $0x120] ss:$16 sps:$4 sm:$0xff]  }
 0x1de   : > { %v567_v55 = vsel %vm562_vm10, %v555_v49, %v565_v52  ;;  %vm563_vm11 = vcmp.gt.f32.partialorder %v558_v53, 0.0  ;;  %v566_v56 = vmul.f32 %v564_v48, %v558_v53  ;;  %v3546_v48 = vld [vmem:[#allocation9 + $0x100] ss:$16 sps:$4 sm:$0xff]   ;;  %v3548_v49 = vld [vmem:[#allocation9 + $0x104] ss:$16 sps:$4 sm:$0xff]  }
 0x1df   : > { %v569_v57 = vrot.slane %v567_v55, 7  ;;  %v575_v60 = vrot.slane %v567_v55, 1 }
 0x1e0   : > { %v568_v58 = vsel %vm563_vm11, %v558_v53, %v566_v56 }
 0x1e1   : > { %v570_v61 = vrot.slane %v568_v58, 7  ;;  %v576_v62 = vrot.slane %v568_v58, 1  ;;  %v590_v63 = vpack.c.bf16 %v568_v58, %v567_v55  ;;  %v3554_v55 = vld [vmem:[#allocation9 + $0x124] ss:$16 sps:$4 sm:$0xff]  }
 0x1e3   : > { %v571_v0 = vsel %vm452_vm3, %v569_v57, %v570_v61  ;;  %v572_v1 = vsel %vm452_vm3, %v570_v61, %v569_v57  ;;  %3254 = vmatmul.mubr.msk.bf16.vlgmr.msra.gmra.mrb[4].mxu0 %vm624_vm12, %v590_v63  ;;  %v577_v4 = vsel %vm463_vm2, %v575_v60, %v576_v62  ;;  %v578_v5 = vsel %vm463_vm2, %v576_v62, %v575_v60  ;;  %v3558_v60 = vld [vmem:[#allocation9 + $0x140] ss:$16 sps:$4 sm:$0xff]   ;;  %v3560_v61 = vld [vmem:[#allocation9 + $0x144] ss:$16 sps:$4 sm:$0xff]  }
 0x1e4   : > { %v573_v6 = vsel %vm4221_vm6, %v572_v1, 0.0  ;;  %3258 = vmatpush3.bf16.msra.mxu0 %v3418_v59  ;;  %v580_v8 = vsel %vm4204_vm5, %v578_v5, 0.0  ;;  %3265 = vmatprep.mubr.msk.bf16.mxu0 %vm3970_vm4, %v3968_v3  ;;  %v3564_v62 = vld [vmem:[#allocation9 + $0x160] ss:$16 sps:$4 sm:$0xff]   ;;  %v3566_v63 = vld [vmem:[#allocation9 + $0x164] ss:$16 sps:$4 sm:$0xff]  }
 0x1e5   : > { %3259 = vmatprep.subr.bf16.mxu0 %v3968_v3  ;;  %v737_v9 = vpack.c.bf16 %v580_v8, %v577_v4  ;;  %v581_v10 = vpack.c.bf16 %v571_v0, %v573_v6  ;;  %v3570_v0 = vld [vmem:[#allocation9 + $0x180] ss:$16 sps:$4 sm:$0xff]   ;;  %v3572_v1 = vld [vmem:[#allocation9 + $0x184] ss:$16 sps:$4 sm:$0xff]  }
 0x1e7   : > { %3278 = vmatmul.mubr.msk.bf16.vlgmr.msra.gmra.mrb[0].mxu1 %vm624_vm12, %v737_v9 }
 0x1e8   : > { %3260 = vmatpush3.bf16.msra.mxu0 %v3420_v7  ;;  %2186 = vmatpush1.bf16.msra.mxu1 %v3498_v32  ;;  %v2942_v7 = vld [vmem:[%s4424_s5] ss:$0 sm:$0xff] }
 0x1e9   : > { %3261 = vmatprep.subr.bf16.mxu0 %v3968_v3  ;;  %2187 = vmatprep.subr.bf16.mxu1 %v3506_v35 }
 0x1ec   : > { %3262 = vmatpush3.bf16.msra.mxu0 %v3421_v11  ;;  %2188 = vmatpush1.bf16.msra.mxu1 %v3504_v34 }
 0x1ed   : > { %3263 = vmatprep.subr.bf16.mxu0 %v3968_v3  ;;  %v3435_v3 = vld [vmem:[#allocation7 + $0xc0] ss:$8 sps:$4 sm:$0xff]   ;;  %2189 = vmatprep.subr.bf16.mxu1 %v3512_v37 }
 0x1ee   : > { %v3453_v37 = vld [vmem:[#allocation7 + $0x20] ss:$8 sps:$4 sm:$0xff]  }
 0x1f0   : > { %3264 = vmatpush3.bf16.msra.mxu0 %v3422_v12  ;;  %2190 = vmatpush1.bf16.msra.mxu1 %v3510_v36  ;;  %v829_v12 = vstv %s2943_s18  ;;  %v3455_v36 = vld [vmem:[#allocation7 + $0x24] ss:$8 sps:$4 sm:$0xff]   ;;  %s3975_s18 = smov [#allocation10]  }
 0x1f1   : > { %961 = vmatprep.subr.bf16.mxu0 %v3425_v13  ;;  %2191 = vmatprep.subr.bf16.mxu1 %v3518_v39  ;;  %v3456_v39 = vld [vmem:[#allocation7 + $0x30] ss:$8 sps:$4 sm:$0xff]   ;;  %s3886_s6 = sshll.u32 %s3975_s18, 4  ;;  %s3887_s6 = int_to_ptr.vmem [resolvable:$false] %s3886_s6 }
 0x1f2   : > { %s3888_s30 = scalar_lea.vmem %s3887_s6, 2048  ;;  %p3889_p9 = scmp.lt.s32.totalorder %s4374_s22, %s3887_s6 }
 0x1f3   : > { %3266 = vmatmul.mubr.msk.bf16.vlgmr.msra.gmra.mrb[8].mxu0 %vm624_vm12, %v581_v10  ;;  %p3890_p10 = scmp.lt.s32.totalorder %s3888_s30, %s3882_s0 }
 0x1f4   : > { %962 = vmatpush1.bf16.msra.mxu0 %v3423_v14  ;;  %993 = vmatprep.mubr.bf16.mxu0 %v3973_v31 }
 0x1f5   : > { %963 = vmatprep.subr.bf16.mxu0 %v3428_v15  ;;  %2192 = vmatpush1.bf16.msra.mxu1 %v3516_v38  ;;  %v3458_v38 = vld [vmem:[#allocation7 + $0x34] ss:$8 sps:$4 sm:$0xff]   ;;  %p3891_p3 = por %p3890_p10, %p3889_p9 }
 0x1f6   : > { %2193 = vmatprep.subr.bf16.mxu1 %v3524_v41  ;;  %v3459_v41 = vld [vmem:[#allocation7 + $0x40] ss:$8 sps:$4 sm:$0xff]  }
 0x1f7   : > { %p3892_p4 = pnand %p3891_p3, %p3885_p6 }
 0x1f8   : > { %964 = vmatpush1.bf16.msra.mxu0 %v3426_v16 }
 0x1f9   : > { %965 = vmatprep.subr.bf16.mxu0 %v3431_v18  ;;  %2194 = vmatpush1.bf16.msra.mxu1 %v3522_v40  ;;  %v3461_v40 = vld [vmem:[#allocation7 + $0x44] ss:$8 sps:$4 sm:$0xff]  }
 0x1fa   : > { %2195 = vmatprep.subr.bf16.mxu1 %v3530_v43  ;;  %v3462_v43 = vld [vmem:[#allocation7 + $0x50] ss:$8 sps:$4 sm:$0xff]  }
 0x1fc   : > { %966 = vmatpush1.bf16.msra.mxu0 %v3429_v19 }
 0x1fd   : > { %967 = vmatprep.subr.bf16.mxu0 %v3434_v21  ;;  %2196 = vmatpush1.bf16.msra.mxu1 %v3528_v42  ;;  %v3464_v42 = vld [vmem:[#allocation7 + $0x54] ss:$8 sps:$4 sm:$0xff]  }
 0x1fe   : > { %2197 = vmatprep.subr.bf16.mxu1 %v3536_v45  ;;  %v3465_v45 = vld [vmem:[#allocation7 + $0x60] ss:$8 sps:$4 sm:$0xff]  }
 0x200   : > { %968 = vmatpush1.bf16.msra.mxu0 %v3432_v20 }
 0x201   : > { %969 = vmatprep.subr.bf16.mxu0 %v3437_v22  ;;  %2198 = vmatpush1.bf16.msra.mxu1 %v3534_v44  ;;  %v3447_v22 = vld [vmem:[#allocation7] ss:$8 sps:$4 sm:$0xff]   ;;  %v3467_v44 = vld [vmem:[#allocation7 + $0x64] ss:$8 sps:$4 sm:$0xff]  }
 0x202   : > { %2199 = vmatprep.subr.bf16.mxu1 %v3542_v47  ;;  %v3468_v47 = vld [vmem:[#allocation7 + $0x70] ss:$8 sps:$4 sm:$0xff]  }
 0x204   : > { %970 = vmatpush1.bf16.msra.mxu0 %v3435_v3 }
 0x205   : > { %971 = vmatprep.subr.bf16.mxu0 %v3440_v23  ;;  %2200 = vmatpush1.bf16.msra.mxu1 %v3540_v46  ;;  %v3470_v46 = vld [vmem:[#allocation7 + $0x74] ss:$8 sps:$4 sm:$0xff]  }
 0x206   : > { %2201 = vmatprep.subr.bf16.mxu1 %v3548_v49  ;;  %v3704_v49 = vld [vmem:[#allocation9 + $0x4a4] ss:$16 sps:$4 sm:$0xff]  }
 0x208   : > { %972 = vmatpush1.bf16.msra.mxu0 %v3438_v24 }
 0x209   : > { %973 = vmatprep.subr.bf16.mxu0 %v3443_v25  ;;  %2202 = vmatpush1.bf16.msra.mxu1 %v3546_v48  ;;  %v3473_v48 = vld [vmem:[#allocation7 + $0x104] ss:$8 sps:$4 sm:$0xff]  }
 0x20a   : > { %2203 = vmatprep.subr.bf16.mxu1 %v3554_v55  ;;  %v3480_v55 = vld [vmem:[#allocation7 + $0x130] ss:$8 sps:$4 sm:$0xff]  }
 0x20c   : > { %974 = vmatpush1.bf16.msra.mxu0 %v3441_v26  ;;  %v3452_v26 = vld [vmem:[#allocation7 + $0x14] ss:$8 sps:$4 sm:$0xff]  }
 0x20d   : > { %975 = vmatprep.subr.bf16.mxu0 %v3446_v28  ;;  %2204 = vmatpush1.bf16.msra.mxu1 %v3552_v54  ;;  %v3477_v54 = vld [vmem:[#allocation7 + $0x120] ss:$8 sps:$4 sm:$0xff]  }
 0x20e   : > { %2205 = vmatprep.subr.bf16.mxu1 %v3560_v61  ;;  %v3494_v61 = vld [vmem:[#allocation7 + $0x174] ss:$8 sps:$4 sm:$0xff]  }
 0x210   : > { %976 = vmatpush1.bf16.msra.mxu0 %v3444_v29 }
 0x211   : > { %1084 = vmatprep.subr.bf16.mxu0 %v3449_v30  ;;  %2206 = vmatpush1.bf16.msra.mxu1 %v3558_v60  ;;  %v3491_v60 = vld [vmem:[#allocation7 + $0x164] ss:$8 sps:$4 sm:$0xff]  }
 0x212   : > { %2207 = vmatprep.subr.bf16.mxu1 %v3566_v63  ;;  %v3497_v63 = vld [vmem:[#allocation9 + $0x204] ss:$16 sps:$4 sm:$0xff]  }
 0x215   : > { %2208 = vmatpush1.bf16.msra.mxu1 %v3564_v62  ;;  %v3492_v62 = vld [vmem:[#allocation7 + $0x170] ss:$8 sps:$4 sm:$0xff]  }
 0x216   : > { %2209 = vmatprep.subr.bf16.mxu1 %v3572_v1  ;;  %v3495_v1 = vld [vmem:[#allocation9 + $0x200] ss:$16 sps:$4 sm:$0xff]  }
 0x219   : > { %2210 = vmatpush1.bf16.msra.mxu1 %v3570_v0 }
 0x2b6   : > { %v662_v50 = vpop.f32.mrb[4].mxu0 }
 0x2b7   : > { %v3255_v51 = vpop.f32.mrb[5].mxu0 }
 0x2b8   : > { %v665_v52 = vpop.f32.mrb[6].mxu0  ;;  %v3476_v51 = vld [vmem:[#allocation7 + $0x114] ss:$8 sps:$4 sm:$0xff]  }
 0x2b9   : > { %v3256_v53 = vpop.f32.mrb[7].mxu0 }
 0x2ba   : > { %v808_v56 = vpop.f32.mrb[0].mxu1  ;;  %v3479_v53 = vld [vmem:[#allocation7 + $0x124] ss:$8 sps:$4 sm:$0xff]  }
 0x2bb   : > { %v3279_v57 = vpop.f32.mrb[1].mxu1 }
 0x2bc   : > { %v811_v58 = vpop.f32.mrb[2].mxu1  ;;  %v3483_v57 = vld [vmem:[#allocation7 + $0x140] ss:$8 sps:$4 sm:$0xff]  }
 0x2bd   : > { %v3280_v59 = vpop.f32.mrb[3].mxu1 }
 0x2be   : > { %v3486_v59 = vld [vmem:[#allocation7 + $0x150] ss:$8 sps:$4 sm:$0xff]  }
 0x2c6   : > { %v730_v4 = vpop.f32.mrb[8].mxu0 }
 0x2c7   : > { %v731_v5 = vadd.f32 %v730_v4, %v662_v50  ;;  %v3267_v6 = vpop.f32.mrb[9].mxu0  ;;  %v3471_v50 = vld [vmem:[#allocation7 + $0x100] ss:$8 sps:$4 sm:$0xff]   ;;  %v3503_v4 = vld [vmem:[#allocation9 + $0x224] ss:$16 sps:$4 sm:$0xff]  }
 0x2c8   : > { %v733_v8 = vpop.f32.mrb[10].mxu0  ;;  %v3509_v6 = vld [vmem:[#allocation9 + $0x244] ss:$16 sps:$4 sm:$0xff]  }
 0x2c9   : > { %v815_v9 = vadd.f32 %v808_v56, %v731_v5  ;;  %v734_v10 = vadd.f32 %v733_v8, %v665_v52  ;;  %v3268_v11 = vpop.f32.mrb[11].mxu0  ;;  %v3474_v52 = vld [vmem:[#allocation7 + $0x110] ss:$8 sps:$4 sm:$0xff]   ;;  %v3485_v56 = vld [vmem:[#allocation7 + $0x144] ss:$8 sps:$4 sm:$0xff]  }
 0x2ca   : > { %v3501_v5 = vld [vmem:[#allocation9 + $0x220] ss:$16 sps:$4 sm:$0xff]   ;;  %v3527_v11 = vld [vmem:[#allocation9 + $0x2a4] ss:$16 sps:$4 sm:$0xff]  }
 0x2cb   : > { %v824_v13 = vadd.f32 %v2942_v7, %v815_v9  ;;  %v816_v14 = vadd.f32 %v811_v58, %v734_v10  ;;  %v3488_v58 = vld [vmem:[#allocation7 + $0x154] ss:$8 sps:$4 sm:$0xff]   ;;  %v3513_v8 = vld [vmem:[#allocation9 + $0x260] ss:$16 sps:$4 sm:$0xff]  }
 0x2cc   : > { %v3521_v9 = vld [vmem:[#allocation9 + $0x284] ss:$16 sps:$4 sm:$0xff]   ;;  %v3519_v10 = vld [vmem:[#allocation9 + $0x280] ss:$16 sps:$4 sm:$0xff]  }
 0x2cd   : > { %vm827_vm13 = vcmp.gt.f32.partialorder %v824_v13, 0.0  ;;  %v830_v15 = vmul.f32 %v829_v12, %v824_v13  ;;  %v825_v16 = vadd.f32 %v2942_v7, %v816_v14  ;;  %v3507_v7 = vld [vmem:[#allocation9 + $0x240] ss:$16 sps:$4 sm:$0xff]  }
 0x2ce   : > { %v3531_v14 = vld [vmem:[#allocation9 + $0x2c0] ss:$16 sps:$4 sm:$0xff]  }
 0x2cf   : > { %v832_v18 = vsel %vm827_vm13, %v824_v13, %v830_v15  ;;  %vm828_vm14 = vcmp.gt.f32.partialorder %v825_v16, 0.0  ;;  %v831_v19 = vmul.f32 %v829_v12, %v825_v16  ;;  %v3525_v12 = vld [vmem:[#allocation9 + $0x2a0] ss:$16 sps:$4 sm:$0xff]   ;;  %v3533_v13 = vld [vmem:[#allocation9 + $0x2c4] ss:$16 sps:$4 sm:$0xff]  }
 0x2d0   : > { %v834_v20 = vrot.slane %v832_v18, 7  ;;  %v840_v3 = vrot.slane %v832_v18, 1  ;;  %v3539_v15 = vld [vmem:[#allocation9 + $0x2e4] ss:$16 sps:$4 sm:$0xff]  }
 0x2d1   : > { %v833_v21 = vsel %vm828_vm14, %v825_v16, %v831_v19  ;;  %v3537_v16 = vld [vmem:[#allocation9 + $0x2e0] ss:$16 sps:$4 sm:$0xff]  }
 0x2d2   : > { %v835_v23 = vrot.slane %v833_v21, 7  ;;  %v841_v24 = vrot.slane %v833_v21, 1  ;;  %v863_v25 = vpack.c.bf16 %v833_v21, %v832_v18  ;;  %v3545_v18 = vld [vmem:[#allocation9 + $0x304] ss:$16 sps:$4 sm:$0xff]   ;;  %v3543_v19 = vld [vmem:[#allocation9 + $0x300] ss:$16 sps:$4 sm:$0xff]  }
 0x2d3   : > { %v3549_v21 = vld [vmem:[#allocation9 + $0x320] ss:$16 sps:$4 sm:$0xff]  }
 0x2d4   : > { %994 = vmatmul.mubr.bf16.vlgmr.msra.gmra.mrb[12].mxu0 %v863_v25  ;;  %v836_v28 = vsel %vm452_vm3, %v834_v20, %v835_v23  ;;  %v837_v29 = vsel %vm452_vm3, %v835_v23, %v834_v20  ;;  %v4268_v30 = vsel %vm463_vm2, %v840_v3, %v841_v24  ;;  %v4272_v32 = vsel %vm463_vm2, %v841_v24, %v840_v3  ;;  %v3551_v20 = vld [vmem:[#allocation9 + $0x324] ss:$16 sps:$4 sm:$0xff]   ;;  %v3555_v3 = vld [vmem:[#allocation9 + $0x340] ss:$16 sps:$4 sm:$0xff]  }
 0x2d5   : > { %1085 = vmatpush1.bf16.msra.mxu0 %v3447_v22  ;;  %1116 = vmatprep.mubr.bf16.mxu0 %v3973_v31  ;;  %v2977_v34 = vpack.c.bf16 %v836_v28, %v837_v29  ;;  %v2996_v35 = vpack.c.bf16 %v4272_v32, %v4268_v30  ;;  %v3557_v22 = vld [vmem:[#allocation9 + $0x344] ss:$16 sps:$4 sm:$0xff]   ;;  %v3561_v24 = vld [vmem:[#allocation9 + $0x360] ss:$16 sps:$4 sm:$0xff]  }
 0x2d6   : > { %1086 = vmatprep.subr.bf16.mxu0 %v3452_v26  ;;  %v3563_v23 = vld [vmem:[#allocation9 + $0x364] ss:$16 sps:$4 sm:$0xff]   ;;  %v3567_v26 = vld [vmem:[#allocation9 + $0x380] ss:$16 sps:$4 sm:$0xff]  }
 0x2d7   : > { %v3569_v25 = vld [vmem:[#allocation9 + $0x384] ss:$16 sps:$4 sm:$0xff]   ;;  %v3573_v29 = vld [vmem:[#allocation9 + $0x3a0] ss:$16 sps:$4 sm:$0xff]  }
 0x2d8   : > { %v3575_v28 = vld [vmem:[#allocation9 + $0x3a4] ss:$16 sps:$4 sm:$0xff]   ;;  %v3576_v32 = vld [vmem:[#allocation9 + $0x1a0] ss:$16 sps:$4 sm:$0xff]  }
 0x2d9   : > { %1087 = vmatpush1.bf16.msra.mxu0 %v3450_v33  ;;  %v3578_v30 = vld [vmem:[#allocation9 + $0x1a4] ss:$16 sps:$4 sm:$0xff]  }
 0x2da   : > { %1088 = vmatprep.subr.bf16.mxu0 %v3455_v36  ;;  %2211 = vmatprep.subr.bf16.mxu1 %v3578_v30  ;;  %v3581_v33 = vld [vmem:[#allocation9 + $0x3c4] ss:$16 sps:$4 sm:$0xff]   ;;  %v3582_v36 = vld [vmem:[#allocation9 + $0x1c0] ss:$16 sps:$4 sm:$0xff]   ;;  %v3605_v30 = vld [vmem:[#allocation9 + $0x24c] ss:$16 sps:$4 sm:$0xff]  }
 0x2db   : > { %2212 = vmatpush1.bf16.msra.mxu1 %v3576_v32  ;;  %v3600_v32 = vld [vmem:[#allocation9 + $0x28] ss:$16 sps:$4 sm:$0xff]  }
 0x2dd   : > { %1089 = vmatpush1.bf16.msra.mxu0 %v3453_v37  ;;  %v3587_v37 = vld [vmem:[#allocation9 + $0x3e4] ss:$16 sps:$4 sm:$0xff]  }
 0x2de   : > { %1090 = vmatprep.subr.bf16.mxu0 %v3458_v38  ;;  %v3585_v38 = vld [vmem:[#allocation9 + $0x3e0] ss:$16 sps:$4 sm:$0xff]  }
 0x2e1   : > { %1091 = vmatpush1.bf16.msra.mxu0 %v3456_v39  ;;  %v3590_v39 = vld [vmem:[#allocation9 + $0x1e4] ss:$16 sps:$4 sm:$0xff]  }
 0x2e2   : > { %1092 = vmatprep.subr.bf16.mxu0 %v3461_v40  ;;  %v3588_v40 = vld [vmem:[#allocation9 + $0x1e0] ss:$16 sps:$4 sm:$0xff]  }
 0x2e5   : > { %1093 = vmatpush1.bf16.msra.mxu0 %v3459_v41  ;;  %v3593_v41 = vld [vmem:[#allocation9 + $0x20c] ss:$16 sps:$4 sm:$0xff]  }
 0x2e6   : > { %1094 = vmatprep.subr.bf16.mxu0 %v3464_v42  ;;  %v3596_v42 = vld [vmem:[#allocation9 + $0xc] ss:$16 sps:$4 sm:$0xff]  }
 0x2e9   : > { %1095 = vmatpush1.bf16.msra.mxu0 %v3462_v43  ;;  %v1276_v43 = vsub.s32 0, %v4190_v2 }
 0x2ea   : > { %1096 = vmatprep.subr.bf16.mxu0 %v3467_v44  ;;  %v1272_v44 = vld [vmem:[%s4426_s7] sm:$0x3] }
 0x2ed   : > { %1097 = vmatpush1.bf16.msra.mxu0 %v3465_v45  ;;  %v1280_v45 = vsub.s32 1, %v4190_v2 }
 0x2ee   : > { %1098 = vmatprep.subr.bf16.mxu0 %v3470_v46  ;;  %v1277_v46 = vrot.slane %v1272_v44, %v1276_v43 }
 0x2f1   : > { %1099 = vmatpush1.bf16.msra.mxu0 %v3468_v47  ;;  %v1281_v47 = vrot.slane %v1272_v44, %v1280_v45  ;;  %v3623_v44 = vld [vmem:[#allocation9 + $0x2ac] ss:$16 sps:$4 sm:$0xff]  }
 0x2f2   : > { %1225 = vmatprep.subr.bf16.mxu0 %v3473_v48 }
 0x2f4   : > { %2978 = vmatmul.mubr.msk.bf16.vlgmr.msra.gmra.mrb[12].mxu0 %vm4280_vm0, %v2977_v34  ;;  %v3579_v34 = vld [vmem:[#allocation9 + $0x3c0] ss:$16 sps:$4 sm:$0xff]  }
 0x2f5   : > { %1226 = vmatpush1.bf16.msra.mxu0 %v3471_v50  ;;  %1257 = vmatprep.mubr.bf16.mxu0 %v3973_v31  ;;  %v3489_v31 = vld [vmem:[#allocation7 + $0x160] ss:$8 sps:$4 sm:$0xff]   ;;  %v1293_v50 = vstv %s2998_s12 }
 0x2f6   : > { %1227 = vmatprep.subr.bf16.mxu0 %v3476_v51 }
 0x2f9   : > { %1228 = vmatpush1.bf16.msra.mxu0 %v3474_v52 }
 0x2fa   : > { %1229 = vmatprep.subr.bf16.mxu0 %v3479_v53 }
 0x2fd   : > { %1230 = vmatpush1.bf16.msra.mxu0 %v3477_v54 }
 0x2fe   : > { %1231 = vmatprep.subr.bf16.mxu0 %v3482_v27 }
 0x301   : > { %1232 = vmatpush1.bf16.msra.mxu0 %v3480_v55 }
 0x302   : > { %1233 = vmatprep.subr.bf16.mxu0 %v3485_v56 }
 0x305   : > { %1234 = vmatpush1.bf16.msra.mxu0 %v3483_v57 }
 0x306   : > { %1235 = vmatprep.subr.bf16.mxu0 %v3488_v58 }
 0x309   : > { %1236 = vmatpush1.bf16.msra.mxu0 %v3486_v59 }
 0x30a   : > { %1237 = vmatprep.subr.bf16.mxu0 %v3491_v60 }
 0x30d   : > { %1238 = vmatpush1.bf16.msra.mxu0 %v3489_v31 }
 0x30e   : > { %1239 = vmatprep.subr.bf16.mxu0 %v3494_v61 }
 0x311   : > { %1240 = vmatpush1.bf16.msra.mxu0 %v3492_v62 }
 0x312   : > { %1779 = vmatprep.subr.bf16.mxu0 %v3497_v63 }
 0x314   : > { %2997 = vmatmul.mubr.msk.bf16.vlgmr.msra.gmra.mrb[12].mxu0 %vm4290_vm1, %v2996_v35  ;;  %v3584_v35 = vld [vmem:[#allocation9 + $0x1c4] ss:$16 sps:$4 sm:$0xff]  }
 0x315   : > { %1780 = vmatpush1.bf16.msra.mxu0 %v3495_v1  ;;  %2213 = vmatprep.subr.bf16.mxu1 %v3584_v35  ;;  %v3611_v35 = vld [vmem:[#allocation9 + $0x26c] ss:$16 sps:$4 sm:$0xff]  }
 0x316   : > { %1781 = vmatprep.subr.bf16.mxu0 %v3503_v4  ;;  %2214 = vmatpush1.bf16.msra.mxu1 %v3582_v36  ;;  %v3606_v36 = vld [vmem:[#allocation9 + $0x48] ss:$16 sps:$4 sm:$0xff]  }
 0x317   : > { %2215 = vmatprep.subr.bf16.mxu1 %v3590_v39  ;;  %v3617_v39 = vld [vmem:[#allocation9 + $0x28c] ss:$16 sps:$4 sm:$0xff]  }
 0x319   : > { %1782 = vmatpush1.bf16.msra.mxu0 %v3501_v5 }
 0x31a   : > { %1783 = vmatprep.subr.bf16.mxu0 %v3509_v6  ;;  %2216 = vmatpush1.bf16.msra.mxu1 %v3588_v40  ;;  %v3612_v40 = vld [vmem:[#allocation9 + $0x68] ss:$16 sps:$4 sm:$0xff]  }
 0x31b   : > { %2228 = vmatprep.subr.bf16.mxu1 %v3596_v42  ;;  %v3620_v42 = vld [vmem:[#allocation9 + $0x8c] ss:$16 sps:$4 sm:$0xff]  }
 0x31d   : > { %1784 = vmatpush1.bf16.msra.mxu0 %v3507_v7 }
 0x31e   : > { %1785 = vmatprep.subr.bf16.mxu0 %v3515_v17 }
 0x321   : > { %1786 = vmatpush1.bf16.msra.mxu0 %v3513_v8 }
 0x322   : > { %1787 = vmatprep.subr.bf16.mxu0 %v3521_v9 }
 0x325   : > { %1788 = vmatpush1.bf16.msra.mxu0 %v3519_v10 }
 0x326   : > { %1789 = vmatprep.subr.bf16.mxu0 %v3527_v11 }
 0x329   : > { %1790 = vmatpush1.bf16.msra.mxu0 %v3525_v12 }
 0x32a   : > { %1791 = vmatprep.subr.bf16.mxu0 %v3533_v13 }
 0x32d   : > { %1792 = vmatpush1.bf16.msra.mxu0 %v3531_v14 }
 0x32e   : > { %1793 = vmatprep.subr.bf16.mxu0 %v3539_v15 }
 0x331   : > { %1794 = vmatpush1.bf16.msra.mxu0 %v3537_v16  ;;  %v3591_v16 = vld [vmem:[#allocation9 + $0x208] ss:$16 sps:$4 sm:$0xff]  }
 0x332   : > { %1795 = vmatprep.subr.bf16.mxu0 %v3545_v18 }
 0x335   : > { %1796 = vmatpush1.bf16.msra.mxu0 %v3543_v19  ;;  %v3599_v19 = vld [vmem:[#allocation9 + $0x22c] ss:$16 sps:$4 sm:$0xff]  }
 0x336   : > { %1797 = vmatprep.subr.bf16.mxu0 %v3551_v20 }
 0x339   : > { %1798 = vmatpush1.bf16.msra.mxu0 %v3549_v21 }
 0x33a   : > { %1799 = vmatprep.subr.bf16.mxu0 %v3557_v22 }
 0x33d   : > { %1800 = vmatpush1.bf16.msra.mxu0 %v3555_v3 }
 0x33e   : > { %1801 = vmatprep.subr.bf16.mxu0 %v3563_v23 }
 0x341   : > { %1802 = vmatpush1.bf16.msra.mxu0 %v3561_v24 }
 0x342   : > { %1803 = vmatprep.subr.bf16.mxu0 %v3569_v25  ;;  %v3594_v25 = vld [vmem:[#allocation9 + $0x8] ss:$16 sps:$4 sm:$0xff]  }
 0x345   : > { %1804 = vmatpush1.bf16.msra.mxu0 %v3567_v26 }
 0x346   : > { %1805 = vmatprep.subr.bf16.mxu0 %v3575_v28  ;;  %v3597_v28 = vld [vmem:[#allocation9 + $0x228] ss:$16 sps:$4 sm:$0xff]  }
 0x349   : > { %1806 = vmatpush1.bf16.msra.mxu0 %v3573_v29  ;;  %v3602_v29 = vld [vmem:[#allocation9 + $0x2c] ss:$16 sps:$4 sm:$0xff]  }
 0x34a   : > { %1807 = vmatprep.subr.bf16.mxu0 %v3581_v33  ;;  %v3603_v33 = vld [vmem:[#allocation9 + $0x248] ss:$16 sps:$4 sm:$0xff]  }
 0x34d   : > { %1808 = vmatpush1.bf16.msra.mxu0 %v3579_v34  ;;  %v3608_v34 = vld [vmem:[#allocation9 + $0x4c] ss:$16 sps:$4 sm:$0xff]  }
 0x34e   : > { %1809 = vmatprep.subr.bf16.mxu0 %v3587_v37  ;;  %v3609_v37 = vld [vmem:[#allocation9 + $0x268] ss:$16 sps:$4 sm:$0xff]  }
 0x351   : > { %1810 = vmatpush1.bf16.msra.mxu0 %v3585_v38  ;;  %v3614_v38 = vld [vmem:[#allocation9 + $0x6c] ss:$16 sps:$4 sm:$0xff]  }
 0x352   : > { %1822 = vmatprep.subr.bf16.mxu0 %v3593_v41  ;;  %v3615_v41 = vld [vmem:[#allocation9 + $0x288] ss:$16 sps:$4 sm:$0xff]  }
 0x3e7   : > { %v1259_v48 = vpop.f32.mrb[12].mxu0 }
 0x3e8   : > { %v1284_v51 = vadd.f32 %v1277_v46, %v1259_v48  ;;  %v1261_v52 = vpop.f32.mrb[13].mxu0  ;;  %v3626_v48 = vld [vmem:[#allocation9 + $0xac] ss:$16 sps:$4 sm:$0xff]  }
 0x3e9   : > { %v1285_v53 = vadd.f32 %v1281_v47, %v1261_v52  ;;  %v1263_v54 = vpop.f32.mrb[14].mxu0  ;;  %v3627_v52 = vld [vmem:[#allocation9 + $0x2c8] ss:$16 sps:$4 sm:$0xff]  }
 0x3ea   : > { %vm1289_vm4 = vcmp.gt.f32.partialorder %v1284_v51, 0.0  ;;  %v1294_v27 = vmul.f32 %v1293_v50, %v1284_v51  ;;  %v1286_v55 = vadd.f32 %v1277_v46, %v1263_v54  ;;  %v1265_v56 = vpop.f32.mrb[15].mxu0  ;;  %v3618_v46 = vld [vmem:[#allocation9 + $0x88] ss:$16 sps:$4 sm:$0xff]   ;;  %v3635_v54 = vld [vmem:[#allocation9 + $0x2ec] ss:$16 sps:$4 sm:$0xff]  }
 0x3eb   : > { %vm1290_vm5 = vcmp.gt.f32.partialorder %v1285_v53, 0.0  ;;  %v1295_v57 = vmul.f32 %v1293_v50, %v1285_v53  ;;  %v1287_v58 = vadd.f32 %v1281_v47, %v1265_v56  ;;  %v3621_v47 = vld [vmem:[#allocation9 + $0x2a8] ss:$16 sps:$4 sm:$0xff]   ;;  %v3638_v56 = vld [vmem:[#allocation9 + $0xec] ss:$16 sps:$4 sm:$0xff]  }
 0x3ec   : > { %v1298_v59 = vsel %vm1289_vm4, %v1284_v51, %v1294_v27  ;;  %vm1291_vm6 = vcmp.gt.f32.partialorder %v1286_v55, 0.0  ;;  %v1296_v60 = vmul.f32 %v1293_v50, %v1286_v55  ;;  %v3624_v51 = vld [vmem:[#allocation9 + $0xa8] ss:$16 sps:$4 sm:$0xff]  }
 0x3ed   : > { %v1299_v31 = vsel %vm1290_vm5, %v1285_v53, %v1295_v57  ;;  %vm1292_vm7 = vcmp.gt.f32.partialorder %v1287_v58, 0.0  ;;  %v1302_v61 = vrot.slane %v1298_v59, 7  ;;  %v1297_v63 = vmul.f32 %v1293_v50, %v1287_v58  ;;  %v3629_v50 = vld [vmem:[#allocation9 + $0x2cc] ss:$16 sps:$4 sm:$0xff]   ;;  %v3630_v27 = vld [vmem:[#allocation9 + $0xc8] ss:$16 sps:$4 sm:$0xff]  }
 0x3ee   : > { %v1300_v62 = vsel %vm1291_vm6, %v1286_v55, %v1296_v60  ;;  %v1314_v1 = vrot.slane %v1298_v59, 1  ;;  %v1303_v7 = vrot.slane %v1299_v31, 7  ;;  %v1315_v17 = vrot.slane %v1299_v31, 1  ;;  %v3632_v53 = vld [vmem:[#allocation9 + $0xcc] ss:$16 sps:$4 sm:$0xff]  }
 0x3ef   : > { %v1304_v4 = vrot.slane %v1300_v62, 7  ;;  %v1316_v5 = vrot.slane %v1300_v62, 1  ;;  %v4308_v6 = vpack.c.bf16 %v1300_v62, %v1298_v59  ;;  %v1301_v8 = vsel %vm1292_vm7, %v1287_v58, %v1297_v63  ;;  %v3633_v55 = vld [vmem:[#allocation9 + $0x2e8] ss:$16 sps:$4 sm:$0xff]   ;;  %v3641_v57 = vld [vmem:[#allocation9 + $0x30c] ss:$16 sps:$4 sm:$0xff]  }
 0x3f0   : > { %v1305_v13 = vrot.slane %v1301_v8, 7  ;;  %v1317_v14 = vrot.slane %v1301_v8, 1  ;;  %v1393_v15 = vpack.c.bf16 %v1301_v8, %v1299_v31  ;;  %v3636_v58 = vld [vmem:[#allocation9 + $0xe8] ss:$16 sps:$4 sm:$0xff]   ;;  %v3644_v60 = vld [vmem:[#allocation9 + $0x10c] ss:$16 sps:$4 sm:$0xff]  }
 0x3f1   : > { %v1306_v9 = vsel %vm452_vm3, %v1302_v61, %v1304_v4  ;;  %v1308_v10 = vsel %vm452_vm3, %v1304_v4, %v1302_v61  ;;  %v1318_v11 = vsel %vm463_vm2, %v1314_v1, %v1316_v5  ;;  %v1320_v12 = vsel %vm463_vm2, %v1316_v5, %v1314_v1  ;;  %v3639_v59 = vld [vmem:[#allocation9 + $0x308] ss:$16 sps:$4 sm:$0xff]   ;;  %v3647_v31 = vld [vmem:[#allocation9 + $0x32c] ss:$16 sps:$4 sm:$0xff]  }
 0x3f2   : > { %v4318_v18 = vpack.c.bf16 %v1306_v9, %v1308_v10  ;;  %v4320_v20 = vpack.c.bf16 %v1320_v12, %v1318_v11  ;;  %1811 = vmatprep.mubr.bf16.mxu0 %v1393_v15  ;;  %v1307_v21 = vsel %vm452_vm3, %v1303_v7, %v1305_v13  ;;  %v1309_v22 = vsel %vm452_vm3, %v1305_v13, %v1303_v7  ;;  %v3642_v61 = vld [vmem:[#allocation9 + $0x108] ss:$16 sps:$4 sm:$0xff]   ;;  %v3650_v63 = vld [vmem:[#allocation9 + $0x12c] ss:$16 sps:$4 sm:$0xff]  }
 0x3f3   : > { %v1319_v3 = vsel %vm463_vm2, %v1315_v17, %v1317_v14  ;;  %v1321_v23 = vsel %vm463_vm2, %v1317_v14, %v1315_v17  ;;  %1812 = vmatmul.mubr.bf16.vlgmr.msra.gmra.mrb[16].mxu0 %v4308_v6  ;;  %v3128_v24 = vpack.c.bf16 %v1307_v21, %v1309_v22  ;;  %v3645_v62 = vld [vmem:[#allocation9 + $0x328] ss:$16 sps:$4 sm:$0xff]   ;;  %v3653_v1 = vld [vmem:[#allocation9 + $0x34c] ss:$16 sps:$4 sm:$0xff]  }
 0x3f4   : > { %v4331_v26 = vpack.c.bf16 %v1321_v23, %v1319_v3  ;;  %1823 = vmatpush1.bf16.msra.mxu0 %v3591_v16  ;;  %1854 = vmatprep.mubr.bf16.mxu0 %v1393_v15  ;;  %v3648_v4 = vld [vmem:[#allocation9 + $0x128] ss:$16 sps:$4 sm:$0xff]   ;;  %v3656_v7 = vld [vmem:[#allocation9 + $0x14c] ss:$16 sps:$4 sm:$0xff]  }
 0x3f5   : > { %3129 = vmatprep.mubr.msk.bf16.mxu1 %vm4280_vm0, %v3128_v24  ;;  %1824 = vmatprep.subr.bf16.mxu0 %v3599_v19  ;;  %v3651_v5 = vld [vmem:[#allocation9 + $0x348] ss:$16 sps:$4 sm:$0xff]   ;;  %v3659_v17 = vld [vmem:[#allocation9 + $0x36c] ss:$16 sps:$4 sm:$0xff]  }
 0x3f6   : > { %3132 = vmatmul.mubr.msk.bf16.vlgmr.msra.gmra.mrb[4].mxu1 %vm4280_vm0, %v4318_v18  ;;  %v3654_v8 = vld [vmem:[#allocation9 + $0x148] ss:$16 sps:$4 sm:$0xff]   ;;  %v3662_v10 = vld [vmem:[#allocation9 + $0x16c] ss:$16 sps:$4 sm:$0xff]  }
 0x3f7   : > { %2229 = vmatpush1.bf16.msra.mxu1 %v3594_v25  ;;  %3135 = vmatprep.mubr.msk.bf16.mxu1 %vm4280_vm0, %v3128_v24  ;;  %v3657_v9 = vld [vmem:[#allocation9 + $0x368] ss:$16 sps:$4 sm:$0xff]   ;;  %v3665_v11 = vld [vmem:[#allocation9 + $0x38c] ss:$16 sps:$4 sm:$0xff]  }
 0x3f8   : > { %1825 = vmatpush1.bf16.msra.mxu0 %v3597_v28  ;;  %2230 = vmatprep.subr.bf16.mxu1 %v3602_v29  ;;  %v3660_v12 = vld [vmem:[#allocation9 + $0x168] ss:$16 sps:$4 sm:$0xff]   ;;  %v3668_v14 = vld [vmem:[#allocation9 + $0x18c] ss:$16 sps:$4 sm:$0xff]  }
 0x3f9   : > { %1826 = vmatprep.subr.bf16.mxu0 %v3605_v30  ;;  %v3663_v13 = vld [vmem:[#allocation9 + $0x388] ss:$16 sps:$4 sm:$0xff]   ;;  %v3671_v15 = vld [vmem:[#allocation9 + $0x3ac] ss:$16 sps:$4 sm:$0xff]  }
 0x3fa   : > { %v3666_v16 = vld [vmem:[#allocation9 + $0x188] ss:$16 sps:$4 sm:$0xff]   ;;  %v3674_v21 = vld [vmem:[#allocation9 + $0x1ac] ss:$16 sps:$4 sm:$0xff]  }
 0x3fb   : > { %2231 = vmatpush1.bf16.msra.mxu1 %v3600_v32  ;;  %v3669_v19 = vld [vmem:[#allocation9 + $0x3a8] ss:$16 sps:$4 sm:$0xff]   ;;  %v3677_v22 = vld [vmem:[#allocation9 + $0x3cc] ss:$16 sps:$4 sm:$0xff]  }
 0x3fc   : > { %1827 = vmatpush1.bf16.msra.mxu0 %v3603_v33  ;;  %2232 = vmatprep.subr.bf16.mxu1 %v3608_v34  ;;  %v3672_v3 = vld [vmem:[#allocation9 + $0x1a8] ss:$16 sps:$4 sm:$0xff]   ;;  %v3680_v24 = vld [vmem:[#allocation9 + $0x1cc] ss:$16 sps:$4 sm:$0xff]   ;;  %v3689_v33 = vld [vmem:[#allocation9 + $0x404] ss:$16 sps:$4 sm:$0xff]  }
 0x3fd   : > { %1828 = vmatprep.subr.bf16.mxu0 %v3611_v35  ;;  %v3675_v23 = vld [vmem:[#allocation9 + $0x3c8] ss:$16 sps:$4 sm:$0xff]   ;;  %v3683_v25 = vld [vmem:[#allocation9 + $0x3ec] ss:$16 sps:$4 sm:$0xff]   ;;  %v3687_v34 = vld [vmem:[#allocation9 + $0x400] ss:$16 sps:$4 sm:$0xff]  }
 0x3fe   : > { %v3678_v28 = vld [vmem:[#allocation9 + $0x1c8] ss:$16 sps:$4 sm:$0xff]   ;;  %v3686_v30 = vld [vmem:[#allocation9 + $0x1ec] ss:$16 sps:$4 sm:$0xff]   ;;  %v3692_v35 = vld [vmem:[#allocation9 + $0x424] ss:$16 sps:$4 sm:$0xff]  }
 0x3ff   : > { %2233 = vmatpush1.bf16.msra.mxu1 %v3606_v36  ;;  %v3681_v29 = vld [vmem:[#allocation9 + $0x3e8] ss:$16 sps:$4 sm:$0xff]   ;;  %v3690_v36 = vld [vmem:[#allocation9 + $0x420] ss:$16 sps:$4 sm:$0xff]  }
 0x400   : > { %1829 = vmatpush1.bf16.msra.mxu0 %v3609_v37  ;;  %2234 = vmatprep.subr.bf16.mxu1 %v3614_v38  ;;  %v3684_v32 = vld [vmem:[#allocation9 + $0x1e8] ss:$16 sps:$4 sm:$0xff]   ;;  %v3695_v37 = vld [vmem:[#allocation9 + $0x444] ss:$16 sps:$4 sm:$0xff]   ;;  %v3693_v38 = vld [vmem:[#allocation9 + $0x440] ss:$16 sps:$4 sm:$0xff]  }
 0x401   : > { %1830 = vmatprep.subr.bf16.mxu0 %v3617_v39  ;;  %v3696_v39 = vld [vmem:[#allocation9 + $0x460] ss:$16 sps:$4 sm:$0xff]  }
 0x403   : > { %2235 = vmatpush1.bf16.msra.mxu1 %v3612_v40  ;;  %v3701_v40 = vld [vmem:[#allocation9 + $0x484] ss:$16 sps:$4 sm:$0xff]  }
 0x404   : > { %1831 = vmatpush1.bf16.msra.mxu0 %v3615_v41  ;;  %2236 = vmatprep.subr.bf16.mxu1 %v3620_v42  ;;  %v3699_v41 = vld [vmem:[#allocation9 + $0x480] ss:$16 sps:$4 sm:$0xff]   ;;  %v3707_v42 = vld [vmem:[#allocation9 + $0x4c4] ss:$16 sps:$4 sm:$0xff]  }
 0x405   : > { %1832 = vmatprep.subr.bf16.mxu0 %v3623_v44  ;;  %v3705_v44 = vld [vmem:[#allocation9 + $0x4c0] ss:$16 sps:$4 sm:$0xff]  }
 0x407   : > { %2237 = vmatpush1.bf16.msra.mxu1 %v3618_v46  ;;  %v3710_v46 = vld [vmem:[#allocation9 + $0x4e4] ss:$16 sps:$4 sm:$0xff]  }
 0x408   : > { %1833 = vmatpush1.bf16.msra.mxu0 %v3621_v47  ;;  %2238 = vmatprep.subr.bf16.mxu1 %v3626_v48  ;;  %v3708_v47 = vld [vmem:[#allocation9 + $0x4e0] ss:$16 sps:$4 sm:$0xff]   ;;  %v3713_v48 = vld [vmem:[#allocation9 + $0x504] ss:$16 sps:$4 sm:$0xff]  }
 0x409   : > { %1834 = vmatprep.subr.bf16.mxu0 %v3629_v50  ;;  %v3711_v50 = vld [vmem:[#allocation9 + $0x500] ss:$16 sps:$4 sm:$0xff]  }
 0x40b   : > { %2239 = vmatpush1.bf16.msra.mxu1 %v3624_v51  ;;  %v3716_v51 = vld [vmem:[#allocation9 + $0x524] ss:$16 sps:$4 sm:$0xff]  }
 0x40c   : > { %1835 = vmatpush1.bf16.msra.mxu0 %v3627_v52  ;;  %2240 = vmatprep.subr.bf16.mxu1 %v3632_v53  ;;  %v3714_v52 = vld [vmem:[#allocation9 + $0x520] ss:$16 sps:$4 sm:$0xff]   ;;  %v3719_v53 = vld [vmem:[#allocation9 + $0x544] ss:$16 sps:$4 sm:$0xff]  }
 0x40d   : > { %1836 = vmatprep.subr.bf16.mxu0 %v3635_v54  ;;  %v3717_v54 = vld [vmem:[#allocation9 + $0x540] ss:$16 sps:$4 sm:$0xff]  }
 0x40f   : > { %2241 = vmatpush1.bf16.msra.mxu1 %v3630_v27  ;;  %v3722_v27 = vld [vmem:[#allocation9 + $0x564] ss:$16 sps:$4 sm:$0xff]  }
 0x410   : > { %1837 = vmatpush1.bf16.msra.mxu0 %v3633_v55  ;;  %2242 = vmatprep.subr.bf16.mxu1 %v3638_v56  ;;  %v3720_v55 = vld [vmem:[#allocation9 + $0x560] ss:$16 sps:$4 sm:$0xff]   ;;  %v3725_v56 = vld [vmem:[#allocation9 + $0x584] ss:$16 sps:$4 sm:$0xff]  }
 0x411   : > { %1838 = vmatprep.subr.bf16.mxu0 %v3641_v57  ;;  %v3723_v57 = vld [vmem:[#allocation9 + $0x580] ss:$16 sps:$4 sm:$0xff]  }
 0x413   : > { %2243 = vmatpush1.bf16.msra.mxu1 %v3636_v58  ;;  %v3728_v58 = vld [vmem:[#allocation9 + $0x5a4] ss:$16 sps:$4 sm:$0xff]  }
 0x414   : > { %1839 = vmatpush1.bf16.msra.mxu0 %v3639_v59  ;;  %2244 = vmatprep.subr.bf16.mxu1 %v3644_v60  ;;  %v3726_v59 = vld [vmem:[#allocation9 + $0x5a0] ss:$16 sps:$4 sm:$0xff]   ;;  %v3731_v60 = vld [vmem:[#allocation9 + $0x5c4] ss:$16 sps:$4 sm:$0xff]  }
 0x415   : > { %1840 = vmatprep.subr.bf16.mxu0 %v3647_v31  ;;  %v3729_v31 = vld [vmem:[#allocation9 + $0x5c0] ss:$16 sps:$4 sm:$0xff]  }
 0x417   : > { %2245 = vmatpush1.bf16.msra.mxu1 %v3642_v61  ;;  %v3734_v61 = vld [vmem:[#allocation9 + $0x5e4] ss:$16 sps:$4 sm:$0xff]  }
 0x418   : > { %1841 = vmatpush1.bf16.msra.mxu0 %v3645_v62  ;;  %2246 = vmatprep.subr.bf16.mxu1 %v3650_v63  ;;  %v3732_v62 = vld [vmem:[#allocation9 + $0x5e0] ss:$16 sps:$4 sm:$0xff]   ;;  %v3737_v63 = vld [vmem:[#allocation9 + $0x40c] ss:$16 sps:$4 sm:$0xff]  }
 0x419   : > { %1842 = vmatprep.subr.bf16.mxu0 %v3653_v1  ;;  %v3735_v1 = vld [vmem:[#allocation9 + $0x408] ss:$16 sps:$4 sm:$0xff]  }
 0x41b   : > { %2247 = vmatpush1.bf16.msra.mxu1 %v3648_v4  ;;  %v3740_v4 = vld [vmem:[#allocation9 + $0x42c] ss:$16 sps:$4 sm:$0xff]  }
 0x41c   : > { %1843 = vmatpush1.bf16.msra.mxu0 %v3651_v5  ;;  %2248 = vmatprep.subr.bf16.mxu1 %v3656_v7  ;;  %v3738_v5 = vld [vmem:[#allocation9 + $0x428] ss:$16 sps:$4 sm:$0xff]   ;;  %v3743_v7 = vld [vmem:[#allocation9 + $0x44c] ss:$16 sps:$4 sm:$0xff]  }
 0x41d   : > { %1844 = vmatprep.subr.bf16.mxu0 %v3659_v17  ;;  %v3741_v17 = vld [vmem:[#allocation9 + $0x448] ss:$16 sps:$4 sm:$0xff]  }
 0x41f   : > { %2249 = vmatpush1.bf16.msra.mxu1 %v3654_v8  ;;  %v3746_v8 = vld [vmem:[#allocation9 + $0x46c] ss:$16 sps:$4 sm:$0xff]  }
 0x420   : > { %1845 = vmatpush1.bf16.msra.mxu0 %v3657_v9  ;;  %2250 = vmatprep.subr.bf16.mxu1 %v3662_v10  ;;  %v3744_v9 = vld [vmem:[#allocation9 + $0x468] ss:$16 sps:$4 sm:$0xff]   ;;  %v3749_v10 = vld [vmem:[#allocation9 + $0x48c] ss:$16 sps:$4 sm:$0xff]  }
 0x421   : > { %1846 = vmatprep.subr.bf16.mxu0 %v3665_v11  ;;  %v3747_v11 = vld [vmem:[#allocation9 + $0x488] ss:$16 sps:$4 sm:$0xff]  }
 0x423   : > { %2251 = vmatpush1.bf16.msra.mxu1 %v3660_v12  ;;  %v3752_v12 = vld [vmem:[#allocation9 + $0x4ac] ss:$16 sps:$4 sm:$0xff]  }
 0x424   : > { %1847 = vmatpush1.bf16.msra.mxu0 %v3663_v13  ;;  %2252 = vmatprep.subr.bf16.mxu1 %v3668_v14  ;;  %v3750_v13 = vld [vmem:[#allocation9 + $0x4a8] ss:$16 sps:$4 sm:$0xff]   ;;  %v3755_v14 = vld [vmem:[#allocation9 + $0x4cc] ss:$16 sps:$4 sm:$0xff]  }
 0x425   : > { %1848 = vmatprep.subr.bf16.mxu0 %v3671_v15  ;;  %v3758_v15 = vld [vmem:[#allocation9 + $0x4ec] ss:$16 sps:$4 sm:$0xff]  }
 0x427   : > { %2253 = vmatpush1.bf16.msra.mxu1 %v3666_v16  ;;  %v3756_v16 = vld [vmem:[#allocation9 + $0x4e8] ss:$16 sps:$4 sm:$0xff]  }
 0x428   : > { %1849 = vmatpush1.bf16.msra.mxu0 %v3669_v19  ;;  %2254 = vmatprep.subr.bf16.mxu1 %v3674_v21  ;;  %v3761_v19 = vld [vmem:[#allocation9 + $0x50c] ss:$16 sps:$4 sm:$0xff]   ;;  %v3759_v21 = vld [vmem:[#allocation9 + $0x508] ss:$16 sps:$4 sm:$0xff]  }
 0x429   : > { %1850 = vmatprep.subr.bf16.mxu0 %v3677_v22  ;;  %v3764_v22 = vld [vmem:[#allocation9 + $0x52c] ss:$16 sps:$4 sm:$0xff]  }
 0x42b   : > { %2255 = vmatpush1.bf16.msra.mxu1 %v3672_v3  ;;  %v3762_v3 = vld [vmem:[#allocation9 + $0x528] ss:$16 sps:$4 sm:$0xff]  }
 0x42c   : > { %1851 = vmatpush1.bf16.msra.mxu0 %v3675_v23  ;;  %2256 = vmatprep.subr.bf16.mxu1 %v3680_v24  ;;  %v3767_v23 = vld [vmem:[#allocation9 + $0x54c] ss:$16 sps:$4 sm:$0xff]   ;;  %v3765_v24 = vld [vmem:[#allocation9 + $0x548] ss:$16 sps:$4 sm:$0xff]  }
 0x42d   : > { %1852 = vmatprep.subr.bf16.mxu0 %v3683_v25  ;;  %v3770_v25 = vld [vmem:[#allocation9 + $0x56c] ss:$16 sps:$4 sm:$0xff]  }
 0x42f   : > { %2257 = vmatpush1.bf16.msra.mxu1 %v3678_v28  ;;  %v3768_v28 = vld [vmem:[#allocation9 + $0x568] ss:$16 sps:$4 sm:$0xff]  }
 0x430   : > { %1853 = vmatpush1.bf16.msra.mxu0 %v3681_v29  ;;  %2258 = vmatprep.subr.bf16.mxu1 %v3686_v30  ;;  %v3773_v29 = vld [vmem:[#allocation9 + $0x58c] ss:$16 sps:$4 sm:$0xff]   ;;  %v3771_v30 = vld [vmem:[#allocation9 + $0x588] ss:$16 sps:$4 sm:$0xff]  }
 0x433   : > { %1855 = vmatmul.mubr.bf16.vlgmr.msra.gmra.mrb[20].mxu0 %v4308_v6  ;;  %2259 = vmatpush1.bf16.msra.mxu1 %v3684_v32  ;;  %v3698_v6 = vld [vmem:[#allocation9 + $0x464] ss:$16 sps:$4 sm:$0xff]   ;;  %v3776_v32 = vld [vmem:[#allocation9 + $0x5ac] ss:$16 sps:$4 sm:$0xff]  }
 0x434   : > { %2658 = vmatprep.subr.bf16.mxu1 %v3689_v33  ;;  %v3774_v33 = vld [vmem:[#allocation9 + $0x5a8] ss:$16 sps:$4 sm:$0xff]  }
 0x436   : > { %3138 = vmatmul.mubr.msk.bf16.vlgmr.msra.gmra.mrb[8].mxu1 %vm4280_vm0, %v4318_v18  ;;  %v3702_v18 = vld [vmem:[#allocation9 + $0x4a0] ss:$16 sps:$4 sm:$0xff]  }
 0x437   : > { %2659 = vmatpush1.bf16.msra.mxu1 %v3687_v34  ;;  %3205 = vmatprep.mubr.msk.bf16.mxu1 %vm4290_vm1, %v4331_v26  ;;  %v3779_v34 = vld [vmem:[#allocation9 + $0x5cc] ss:$16 sps:$4 sm:$0xff]  }
 0x438   : > { %2660 = vmatprep.subr.bf16.mxu1 %v3692_v35  ;;  %v3777_v35 = vld [vmem:[#allocation9 + $0x5c8] ss:$16 sps:$4 sm:$0xff]  }
 0x43b   : > { %2661 = vmatpush1.bf16.msra.mxu1 %v3690_v36  ;;  %v3782_v36 = vld [vmem:[#allocation9 + $0x5ec] ss:$16 sps:$4 sm:$0xff]  }
 0x43c   : > { %2662 = vmatprep.subr.bf16.mxu1 %v3695_v37  ;;  %v3780_v37 = vld [vmem:[#allocation9 + $0x5e8] ss:$16 sps:$4 sm:$0xff]  }
 0x43f   : > { %2663 = vmatpush1.bf16.msra.mxu1 %v3693_v38 }
 0x440   : > { %2664 = vmatprep.subr.bf16.mxu1 %v3698_v6 }
 0x443   : > { %2665 = vmatpush1.bf16.msra.mxu1 %v3696_v39 }
 0x444   : > { %2666 = vmatprep.subr.bf16.mxu1 %v3701_v40 }
 0x447   : > { %2667 = vmatpush1.bf16.msra.mxu1 %v3699_v41 }
 0x448   : > { %2668 = vmatprep.subr.bf16.mxu1 %v3704_v49 }
 0x44b   : > { %2669 = vmatpush1.bf16.msra.mxu1 %v3702_v18 }
 0x44c   : > { %2670 = vmatprep.subr.bf16.mxu1 %v3707_v42 }
 0x44f   : > { %2671 = vmatpush1.bf16.msra.mxu1 %v3705_v44  ;;  %v2752_v44 = vld [vmem:[%s4428_s9] sm:$0xf] }
 0x450   : > { %2672 = vmatprep.subr.bf16.mxu1 %v3710_v46  ;;  %v2757_v46 = vrot.slane %v2752_v44, %v1276_v43  ;;  %v2764_v43 = vsub.s32 2, %v4190_v2 }
 0x453   : > { %2673 = vmatpush1.bf16.msra.mxu1 %v3708_v47 }
 0x454   : > { %2674 = vmatprep.subr.bf16.mxu1 %v3713_v48 }
 0x457   : > { %2675 = vmatpush1.bf16.msra.mxu1 %v3711_v50 }
 0x458   : > { %2676 = vmatprep.subr.bf16.mxu1 %v3716_v51 }
 0x45b   : > { %2677 = vmatpush1.bf16.msra.mxu1 %v3714_v52 }
 0x45c   : > { %2678 = vmatprep.subr.bf16.mxu1 %v3719_v53 }
 0x45f   : > { %2679 = vmatpush1.bf16.msra.mxu1 %v3717_v54 }
 0x460   : > { %2680 = vmatprep.subr.bf16.mxu1 %v3722_v27 }
 0x463   : > { %2681 = vmatpush1.bf16.msra.mxu1 %v3720_v55 }
 0x464   : > { %2682 = vmatprep.subr.bf16.mxu1 %v3725_v56 }
 0x467   : > { %2683 = vmatpush1.bf16.msra.mxu1 %v3723_v57 }
 0x468   : > { %2684 = vmatprep.subr.bf16.mxu1 %v3728_v58  ;;  %v2765_v58 = vrot.slane %v2752_v44, %v2764_v43 }
 0x46b   : > { %2685 = vmatpush1.bf16.msra.mxu1 %v3726_v59 }
 0x46c   : > { %2686 = vmatprep.subr.bf16.mxu1 %v3731_v60 }
 0x46f   : > { %2687 = vmatpush1.bf16.msra.mxu1 %v3729_v31 }
 0x470   : > { %2688 = vmatprep.subr.bf16.mxu1 %v3734_v61 }
 0x473   : > { %2689 = vmatpush1.bf16.msra.mxu1 %v3732_v62 }
 0x474   : > { %2701 = vmatprep.subr.bf16.mxu1 %v3737_v63 }
 0x476   : > { %3208 = vmatmul.mubr.msk.bf16.vlgmr.msra.gmra.mrb[4].mxu1 %vm4290_vm1, %v4320_v20 }
 0x477   : > { %2702 = vmatpush1.bf16.msra.mxu1 %v3735_v1  ;;  %3211 = vmatprep.mubr.msk.bf16.mxu1 %vm4290_vm1, %v4331_v26  ;;  %v3753_v26 = vld [vmem:[#allocation9 + $0x4c8] ss:$16 sps:$4 sm:$0xff]  }
 0x478   : > { %2703 = vmatprep.subr.bf16.mxu1 %v3740_v4 }
 0x47b   : > { %2704 = vmatpush1.bf16.msra.mxu1 %v3738_v5 }
 0x47c   : > { %2705 = vmatprep.subr.bf16.mxu1 %v3743_v7 }
 0x47f   : > { %2706 = vmatpush1.bf16.msra.mxu1 %v3741_v17 }
 0x480   : > { %2707 = vmatprep.subr.bf16.mxu1 %v3746_v8 }
 0x483   : > { %2708 = vmatpush1.bf16.msra.mxu1 %v3744_v9 }
 0x484   : > { %2709 = vmatprep.subr.bf16.mxu1 %v3749_v10 }
 0x487   : > { %2710 = vmatpush1.bf16.msra.mxu1 %v3747_v11 }
 0x488   : > { %2711 = vmatprep.subr.bf16.mxu1 %v3752_v12 }
 0x48b   : > { %2712 = vmatpush1.bf16.msra.mxu1 %v3750_v13 }
 0x48c   : > { %2713 = vmatprep.subr.bf16.mxu1 %v3755_v14 }
 0x48f   : > { %2714 = vmatpush1.bf16.msra.mxu1 %v3753_v26 }
 0x490   : > { %2715 = vmatprep.subr.bf16.mxu1 %v3758_v15 }
 0x493   : > { %2716 = vmatpush1.bf16.msra.mxu1 %v3756_v16 }
 0x494   : > { %2717 = vmatprep.subr.bf16.mxu1 %v3761_v19 }
 0x497   : > { %2718 = vmatpush1.bf16.msra.mxu1 %v3759_v21 }
 0x498   : > { %2719 = vmatprep.subr.bf16.mxu1 %v3764_v22 }
 0x49b   : > { %2720 = vmatpush1.bf16.msra.mxu1 %v3762_v3 }
 0x49c   : > { %2721 = vmatprep.subr.bf16.mxu1 %v3767_v23 }
 0x49f   : > { %2722 = vmatpush1.bf16.msra.mxu1 %v3765_v24 }
 0x4a0   : > { %2723 = vmatprep.subr.bf16.mxu1 %v3770_v25 }
 0x4a3   : > { %2724 = vmatpush1.bf16.msra.mxu1 %v3768_v28 }
 0x4a4   : > { %2725 = vmatprep.subr.bf16.mxu1 %v3773_v29 }
 0x4a7   : > { %2726 = vmatpush1.bf16.msra.mxu1 %v3771_v30 }
 0x4a8   : > { %2727 = vmatprep.subr.bf16.mxu1 %v3776_v32 }
 0x4ab   : > { %2728 = vmatpush1.bf16.msra.mxu1 %v3774_v33 }
 0x4ac   : > { %2729 = vmatprep.subr.bf16.mxu1 %v3779_v34 }
 0x4af   : > { %2730 = vmatpush1.bf16.msra.mxu1 %v3777_v35 }
 0x4b0   : > { %2731 = vmatprep.subr.bf16.mxu1 %v3782_v36 }
 0x4b3   : > { %2732 = vmatpush1.bf16.msra.mxu1 %v3780_v37 }
 0x4b6   : > { %3214 = vmatmul.mubr.msk.bf16.vlgmr.msra.gmra.mrb[8].mxu1 %vm4290_vm1, %v4320_v20  ;;  %v2761_v20 = vrot.slane %v2752_v44, %v1280_v45  ;;  %v2768_v45 = vsub.s32 3, %v4190_v2 }
 0x4b8   : > { %v2769_v60 = vrot.slane %v2752_v44, %v2768_v45 }
 0x4c6   : > { %v1813_v38 = vpop.f32.mrb[16].mxu0 }
 0x4c7   : > { %v1815_v6 = vpop.f32.mrb[17].mxu0 }
 0x4c8   : > { %v1817_v39 = vpop.f32.mrb[18].mxu0 }
 0x4c9   : > { %v1819_v40 = vpop.f32.mrb[19].mxu0 }
 0x506   : > { %v1856_v41 = vpop.f32.mrb[20].mxu0 }
 0x507   : > { %v1858_v49 = vpop.f32.mrb[21].mxu0 }
 0x508   : > { %v1860_v18 = vpop.f32.mrb[22].mxu0 }
 0x509   : > { %v1862_v42 = vpop.f32.mrb[23].mxu0 }
 0x549   : > { %v2692_v0 = vpop.f32.mrb[4].mxu1 }
 0x54a   : > { %v3281_v47 = vadd.f32 %v2692_v0, %v1813_v38  ;;  %v2694_v48 = vpop.f32.mrb[5].mxu1 }
 0x54b   : > { %v3282_v50 = vadd.f32 %v2694_v48, %v1815_v6  ;;  %v2696_v51 = vpop.f32.mrb[6].mxu1 }
 0x54c   : > { %v2774_v52 = vadd.f32 %v3281_v47, %v2757_v46  ;;  %v3283_v53 = vadd.f32 %v2696_v51, %v1817_v39  ;;  %v2698_v54 = vpop.f32.mrb[7].mxu1 }
 0x54d   : > { %v2775_v27 = vadd.f32 %v3282_v50, %v2761_v20  ;;  %v3284_v55 = vadd.f32 %v2698_v54, %v1819_v40 }
 0x54e   : > { %2782 = vst [vmem:[%s410_s20] sm:$0xff] %v2774_v52  ;;  %v2778_v56 = vadd.f32 %v3283_v53, %v2757_v46 }
 0x54f   : > { %2783 = vst [vmem:[%s410_s20 + $0x8] sm:$0xff] %v2775_v27  ;;  %v2779_v57 = vadd.f32 %v3284_v55, %v2761_v20 }
 0x550   : > { %2786 = vst [vmem:[%s410_s20 + $0x20] sm:$0xff] %v2778_v56 }
 0x551   : > { %2787 = vst [vmem:[%s410_s20 + $0x28] sm:$0xff] %v2779_v57 }
 0x589   : > { %v2735_v59 = vpop.f32.mrb[8].mxu1 }
 0x58a   : > { %v3285_v31 = vadd.f32 %v2735_v59, %v1856_v41  ;;  %v2737_v61 = vpop.f32.mrb[9].mxu1 }
 0x58b   : > { %v3286_v62 = vadd.f32 %v2737_v61, %v1858_v49  ;;  %v2739_v63 = vpop.f32.mrb[10].mxu1 }
 0x58c   : > { %v2776_v1 = vadd.f32 %v3285_v31, %v2765_v58  ;;  %v3287_v4 = vadd.f32 %v2739_v63, %v1860_v18  ;;  %v2741_v5 = vpop.f32.mrb[11].mxu1 }
 0x58d   : > { %v2777_v7 = vadd.f32 %v3286_v62, %v2769_v60  ;;  %v3288_v17 = vadd.f32 %v2741_v5, %v1862_v42 }
 0x58e   : > { %2784 = vst [vmem:[%s410_s20 + $0x10] sm:$0xff] %v2776_v1  ;;  %v2780_v8 = vadd.f32 %v3287_v4, %v2765_v58 }
 0x58f   : > { %2785 = vst [vmem:[%s410_s20 + $0x18] sm:$0xff] %v2777_v7  ;;  %v2781_v2 = vadd.f32 %v3288_v17, %v2769_v60 }
 0x590   : > { %2788 = vst [vmem:[%s410_s20 + $0x30] sm:$0xff] %v2780_v8 }
 0x591   : > { %2789 = vst [vmem:[%s410_s20 + $0x38] sm:$0xff] %v2781_v2 }
 0x592   : > { %3895 = shalt.err (!%p3892_p4)
}
 0x593   : > { %s3896_s12 = scalar_lea.hbm %s4372_s29, 1024  ;;  %s3900_s25 = scalar_lea.hbm %s4429_s10, 2048 }
 0x594   : > { %p3897_p0 = scmp.ne.s32.totalorder %s4372_s29, %s3896_s12  ;;  %p3901_p11 = scmp.lt.u32.totalorder %s4372_s29, %s4429_s10 }
 0x595   : > { %p3902_p12 = scmp.lt.u32.totalorder %s3900_s25, %s3896_s12  ;;  %p3904_p1 = scmp.lt.u32.totalorder %s3896_s12, %s4372_s29 }
 0x596   : > { %p3898_p7 = pnand %p3897_p0, %p4465_p2 }
 0x597   : > { %p3903_p13 = por %p3902_p12, %p3901_p11 }
 0x598   : > { %p3899_p8 = pneg %p3898_p7 }
 0x599   : > { %p3905_p5 = por %p3904_p1, %p3903_p13 }
 0x59b   : > { %p3906_p6 = pnand %p3905_p5, %p3899_p8 }
 0x59d   : > { %3909 = shalt.err (!%p3906_p6)
}
 0x59e   : > { %s3976_s27 = smov 512   ;;  %s3977_s20 = smov 32  }
 0x59f   : > { %3321 = dma.vmem_to_hbm [thread:$0]  (%p4465_p2), %s4374_s22, 1024, %s4372_s29, %s4378_s17, %s3976_s27, %s3976_s27, %s3977_s20  }
 0x5a0 PF: > { %s4466_s15 = sld [smem:[#allocation18_spill]]  ;;  %p3348_p9 = scmp.ge.s32.totalorder %s3956_s16, 2 }
 0x5a1   : > { %s2819_s21 = sand.u32 1, %s3944_s13  }
 0x5a2   : > { %s2820_s26 = scalar_lea.sflag [#allocation4], %s2819_s21 }
 0x5a6   : > { %p4467_p10 = scmp.ne.s32.totalorder %s4466_s15, 0 }
 0x5a8   : > { %p3337_p3 = pnand %p3348_p9, %p4467_p10 }
 0x5aa   : > { %3939 = dma.done.wait (!%p3337_p3), %s2820_s26, 1024  }
 0x5ab   : > { %3941 = vsyncadd (!%p3337_p3), %s2820_s26, 4294966272  ;;  %s4468_s16 = sld [smem:[#allocation16_spill]]  ;;  %s4469_s0 = sld [smem:[#allocation15_spill]] }
 0x5ac   : > { %s4470_s15 = sld [smem:[#allocation17_spill]]  ;;  %s4471_s13 = smov %s3948_s14 }
 0x5b1   : > { %p23_p4 = scmp.ge.s32.totalorder %s4468_s16, 4   ;;  %s4472_s14 = smov %s4469_s0 }
 0x5b3   :  { %25 = sbr.rel (!%p23_p4) target bundleno = 9 (0x9), region = 119 }
 0x5ba   :  { %2825 = vsyncpa [#allocation3], 1 }
 0x5bb   :  { %2827 = vsyncpa [#allocation3 + $0x1], 1 }
 0x5bc   :  { %2828 = vsyncpa [#allocation8], 1 }
 0x5bd   :  { %2829 = vsyncpa [#allocation4], 1 }
 0x5be   :  { %2831 = vsyncpa [#allocation4 + $0x1], 1 }
 0x5bf   :  { %2832 = vsyncpa [#allocation5], 1 }
 0x5c0   :  { %2834 = vsyncpa [#allocation5 + $0x1], 1 }

</bundles_post_ra>
